<compile_context>
chip_gen: v5e
topology: v5e:2x2
jax: 0.10.0
libtpu: 0.0.40
codegen_flags: <defaults>
</compile_context>

<pallas_src>
import math

import jax
import jax.numpy as jnp
from jax import lax
from jax.experimental import pallas as pl
from jax.experimental.pallas import tpu as pltpu

EPS = 1e-5
NEG_SLOPE = 0.2
DIMS = [512, 512, 256, 128, 64, 1]  # input_dim=512 (module default)
OUT_PAD = 128                       # lane-dense width, tiny-batch train path only


def _round_up(x, m):
    return (x + m - 1) // m * m


def _vmem_limit_bytes(rows_resident):
    """Right-sized scoped-VMEM request: weights (double-buffered) + per-row
    activations/temporaries + streamed tiles + headroom. Stays far below the
    v7x 64 MiB physical ceiling."""
    weights = 2 * 2 * sum(DIMS[i] * DIMS[i + 1] for i in range(4))  # bf16 x 2 bufs
    vecs = 4 * 4 * sum(DIMS[1:5]) + 4 * 2 * OUT_PAD                 # gamma/beta/bias rows
    acts = rows_resident * sum(DIMS[:5]) * 4 * 3                    # f32 + bf16 + temps
    io = rows_resident * (DIMS[0] + OUT_PAD) * 4 * 2                # x/out tiles, 2 bufs
    return int(min(weights + vecs + acts + io + (4 << 20), 48 << 20))


# ---------------------------------------------------------------------------
# Kernels
# ---------------------------------------------------------------------------

def _disc_train_kernel(x_ref,
                       w1, g1, be1,
                       w2, g2, be2,
                       w3, g3, be3,
                       w4, g4, be4,
                       w5, b5,
                       o_ref):
    """Whole MLP fused, train-mode BN (batch stats). Everything VMEM-resident."""

    def linear_bn_lrelu(h_bf16, w_ref, g_ref, be_ref):
        # Linear bias omitted: it cancels exactly against train-mode BN's mu.
        z = jnp.dot(h_bf16, w_ref[...], preferred_element_type=jnp.float32)
        # BatchNorm1d, training-mode statistics, biased variance.
        # Centered second moment (not E[z^2]-mu^2) to avoid cancellation; clamp >= 0.
        mu = jnp.mean(z, axis=0, keepdims=True)
        zc = z - mu
        var = jnp.maximum(jnp.mean(zc * zc, axis=0, keepdims=True), 0.0)
        scale = g_ref[...] * lax.rsqrt(var + EPS)
        z = zc * scale + be_ref[...]
        # LeakyReLU(0.2), back to bf16 for the next MXU matmul.
        z = jnp.where(z >= 0, z, NEG_SLOPE * z)
        return z.astype(jnp.bfloat16)

    h = x_ref[...].astype(jnp.bfloat16)
    h = linear_bn_lrelu(h, w1, g1, be1)
    h = linear_bn_lrelu(h, w2, g2, be2)
    h = linear_bn_lrelu(h, w3, g3, be3)
    h = linear_bn_lrelu(h, w4, g4, be4)
    # Final Linear(64 -> 1) + Sigmoid, lane-dense (padded to 128 output lanes;
    # free at tiny batch, wrapper slices [:, :1]).
    z = jnp.dot(h, w5[...], preferred_element_type=jnp.float32) + b5[...]
    o_ref[...] = jax.nn.sigmoid(z)


def _disc_eval_kernel(x_ref,
                      w1, b1, w2, b2, w3, b3, w4, b4,
                      w5, b5,
                      o_ref):
    """Batch-tiled eval-mode forward. BN (running stats) + Linear bias already
    folded into (w, b) at prep time, so each row block is independent."""

    def layer(h_bf16, w_ref, b_ref):
        z = jnp.dot(h_bf16, w_ref[...], preferred_element_type=jnp.float32) + b_ref[...]
        return jnp.where(z >= 0, z, NEG_SLOPE * z)

    h = x_ref[...].astype(jnp.bfloat16)
    h = layer(h, w1, b1).astype(jnp.bfloat16)
    h = layer(h, w2, b2).astype(jnp.bfloat16)
    h = layer(h, w3, b3).astype(jnp.bfloat16)
    h4 = layer(h, w4, b4)                                   # (TB, 64) f32
    # Final Linear(64 -> 1): multiply-reduce (no dead sigmoid lanes, no pad).
    z = jnp.sum(h4 * w5[...], axis=-1, keepdims=True) + b5[...]
    o_ref[...] = jax.nn.sigmoid(z)                          # (TB, 1)


# ---------------------------------------------------------------------------
# Parameters
# ---------------------------------------------------------------------------

def init_params(key, dims=DIMS):
    """Deterministic params with PyTorch-style shapes.

    Linear weight (out, in) ~ U(-1/sqrt(fan_in), .); bias same. BN gamma/beta
    and running_mean/running_var get nontrivial values so both the train-mode
    and eval-mode BN paths are actually exercised."""
    params = []
    for i in range(5):
        fan_in, fan_out = dims[i], dims[i + 1]
        key, kw, kb = jax.random.split(key, 3)
        bound = 1.0 / math.sqrt(fan_in)
        w = jax.random.uniform(kw, (fan_out, fan_in), jnp.float32, -bound, bound)
        b = jax.random.uniform(kb, (fan_out,), jnp.float32, -bound, bound)
        layer = {"w": w, "b": b}
        if i < 4:
            key, kg, kbe, krm, krv = jax.random.split(key, 5)
            layer["gamma"] = jax.random.uniform(kg, (fan_out,), jnp.float32, 0.5, 1.5)
            layer["beta"] = jax.random.uniform(kbe, (fan_out,), jnp.float32, -0.5, 0.5)
            layer["running_mean"] = jax.random.uniform(krm, (fan_out,), jnp.float32, -0.5, 0.5)
            layer["running_var"] = jax.random.uniform(krv, (fan_out,), jnp.float32, 0.5, 1.5)
        params.append(layer)
    return params


def prepare_train_params(params):
    """One-time prep for the train-mode kernel: transpose to (in,out) + bf16,
    gamma/beta as (1,out) f32 rows, drop b1..b4 (cancelled by train-mode BN),
    zero-pad the final layer to 128 output lanes."""
    flat = []
    for i, layer in enumerate(params):
        w_t = jnp.transpose(layer["w"])                      # (in, out)
        if i < 4:
            flat.append(w_t.astype(jnp.bfloat16))
            flat.append(layer["gamma"].reshape(1, -1))
            flat.append(layer["beta"].reshape(1, -1))
        else:
            out_dim = w_t.shape[1]                           # 1
            w5 = jnp.pad(w_t, ((0, 0), (0, OUT_PAD - out_dim)))
            b5 = jnp.pad(layer["b"].reshape(1, -1), ((0, 0), (0, OUT_PAD - out_dim)))
            flat.append(w5.astype(jnp.bfloat16))             # (64, 128) bf16
            flat.append(b5)                                  # (1, 128) f32
    return tuple(flat)


def prepare_eval_params(params):
    """One-time prep for the batch-tiled eval kernel: fold BN (running stats)
    and the Linear bias into a single (in,out) bf16 weight + (1,out) f32 bias
    per layer. Final layer kept as a (1,64) f32 row + scalar bias."""
    flat = []
    for i in range(4):
        p = params[i]
        scale = p["gamma"] * lax.rsqrt(p["running_var"] + EPS)          # (out,)
        w_t = jnp.transpose(p["w"]) * scale[None, :]                    # (in, out)
        b = (p["b"] - p["running_mean"]) * scale + p["beta"]            # (out,)
        flat.append(w_t.astype(jnp.bfloat16))
        flat.append(b.reshape(1, -1).astype(jnp.float32))
    flat.append(params[4]["w"].astype(jnp.float32))                     # (1, 64)
    flat.append(params[4]["b"].reshape(1, 1).astype(jnp.float32))       # (1, 1)
    return tuple(flat)


# ---------------------------------------------------------------------------
# Wrappers
# ---------------------------------------------------------------------------

def discriminator_forward_train(x, flat_params):
    """Train-mode (batch-stats BN) forward. x: (B, 512) f32. Small-batch path."""
    B = x.shape[0]
    vmem = pl.BlockSpec(memory_space=pltpu.MemorySpace.VMEM)

    flops = 2 * B * (512 * 512 + 512 * 256 + 256 * 128 + 128 * 64 + 64 * OUT_PAD)
    weight_bytes = 2 * (512 * 512 + 512 * 256 + 256 * 128 + 128 * 64 + 64 * OUT_PAD)
    bn_bytes = 4 * 2 * sum(DIMS[1:5]) + 4 * OUT_PAD
    bytes_accessed = weight_bytes + bn_bytes + 4 * B * 512 + 4 * B * OUT_PAD

    out_padded = pl.pallas_call(
        _disc_train_kernel,
        out_shape=jax.ShapeDtypeStruct((B, OUT_PAD), jnp.float32),
        in_specs=[vmem] * (1 + len(flat_params)),
        out_specs=vmem,
        compiler_params=pltpu.CompilerParams(
            vmem_limit_bytes=_vmem_limit_bytes(B)),
        cost_estimate=pl.CostEstimate(
            flops=flops,
            transcendentals=B * OUT_PAD + sum(DIMS[1:5]),
            bytes_accessed=bytes_accessed),
    )(x, *flat_params)
    return out_padded[:, :1]


def discriminator_forward_eval(x, flat_params, block_rows=256):
    """Eval-mode (folded BN) forward, batch-tiled. x: (B, 512) f32 -> (B, 1)."""
    B = x.shape[0]
    TB = max(8, min(block_rows, _round_up(B, 8)))
    Bp = _round_up(B, TB)
    if Bp != B:
        x = jnp.pad(x, ((0, Bp - B), (0, 0)))
    grid = (Bp // TB,)

    # x / out tiles stream with the grid; all weights/biases get a constant
    # block index so they are DMA'd once and stay VMEM-resident.
    in_specs = [pl.BlockSpec((TB, DIMS[0]), lambda i: (i, 0))]
    for p in flat_params:
        in_specs.append(pl.BlockSpec(p.shape, lambda i: (0, 0)))
    out_spec = pl.BlockSpec((TB, 1), lambda i: (i, 0))

    flops = 2 * Bp * (512 * 512 + 512 * 256 + 256 * 128 + 128 * 64 + 64)
    weight_bytes = 2 * sum(DIMS[i] * DIMS[i + 1] for i in range(4)) + 4 * (64 + 1)
    bias_bytes = 4 * sum(DIMS[1:5])
    bytes_accessed = weight_bytes + bias_bytes + 4 * Bp * 512 + 4 * Bp

    out = pl.pallas_call(
        _disc_eval_kernel,
        out_shape=jax.ShapeDtypeStruct((Bp, 1), jnp.float32),
        grid_spec=pltpu.PrefetchScalarGridSpec(
            num_scalar_prefetch=0,
            grid=grid,
            in_specs=in_specs,
            out_specs=out_spec),
        compiler_params=pltpu.CompilerParams(
            dimension_semantics=("parallel",),
            vmem_limit_bytes=_vmem_limit_bytes(TB)),
        cost_estimate=pl.CostEstimate(
            flops=flops,
            transcendentals=Bp,
            bytes_accessed=bytes_accessed),
    )(x, *flat_params)
    return out[:B]


# ---------------------------------------------------------------------------
# Pure-JAX references (f32)
# ---------------------------------------------------------------------------

def discriminator_ref_train(x, params):
    h = x.astype(jnp.float32)
    for i, layer in enumerate(params):
        h = h @ layer["w"].T + layer["b"]
        if i < 4:
            mu = jnp.mean(h, axis=0, keepdims=True)
            var = jnp.mean((h - mu) ** 2, axis=0, keepdims=True)
            h = layer["gamma"] * (h - mu) * lax.rsqrt(var + EPS) + layer["beta"]
            h = jnp.where(h >= 0, h, NEG_SLOPE * h)
    return jax.nn.sigmoid(h)


def discriminator_ref_eval(x, params):
    h = x.astype(jnp.float32)
    for i, layer in enumerate(params):
        h = h @ layer["w"].T + layer["b"]
        if i < 4:
            h = (layer["gamma"] * (h - layer["running_mean"])
                 * lax.rsqrt(layer["running_var"] + EPS) + layer["beta"])
            h = jnp.where(h >= 0, h, NEG_SLOPE * h)
    return jax.nn.sigmoid(h)


if __name__ == "__main__":
    key = jax.random.PRNGKey(0)
    kx1, kx2, kp = jax.random.split(key, 3)
    params = init_params(kp)

    # Path 1: train-mode BN (module default), tiny batch, fused grid-less kernel.
    B_train = 16  # multiple of 16: full bf16 vreg sublane packing
    x_tr = jax.random.normal(kx1, (B_train, DIMS[0]), jnp.float32)
    train_flat = prepare_train_params(params)
    fwd_train = jax.jit(discriminator_forward_train)
    out_tr = jax.block_until_ready(fwd_train(x_tr, train_flat))
    ref_tr = discriminator_ref_train(x_tr, params)
    assert out_tr.shape == (B_train, 1)
    assert bool(jnp.allclose(out_tr, ref_tr, atol=2e-2, rtol=2e-2)), \
        "train-mode mismatch vs reference"

    # Path 2: eval-mode (folded BN), batch-tiled parallel grid (256 rows/block).
    B_eval = 512
    x_ev = jax.random.normal(kx2, (B_eval, DIMS[0]), jnp.float32)
    eval_flat = prepare_eval_params(params)
    fwd_eval = jax.jit(discriminator_forward_eval, static_argnames=("block_rows",))
    out_ev = jax.block_until_ready(fwd_eval(x_ev, eval_flat, block_rows=256))
    ref_ev = discriminator_ref_eval(x_ev, params)
    assert out_ev.shape == (B_eval, 1)
    assert bool(jnp.allclose(out_ev, ref_ev, atol=2e-2, rtol=2e-2)), \
        "eval-mode mismatch vs reference"

    print("KERNEL_OK")
</pallas_src>

<mosaic_0001>
module attributes {stable_mosaic.version = 11 : i64} {
  func.func @_disc_train_kernel(%arg0: memref<16x512xf32, #tpu.memory_space<vmem>>, %arg1: memref<512x512xbf16, #tpu.memory_space<vmem>>, %arg2: memref<1x512xf32, #tpu.memory_space<vmem>>, %arg3: memref<1x512xf32, #tpu.memory_space<vmem>>, %arg4: memref<512x256xbf16, #tpu.memory_space<vmem>>, %arg5: memref<1x256xf32, #tpu.memory_space<vmem>>, %arg6: memref<1x256xf32, #tpu.memory_space<vmem>>, %arg7: memref<256x128xbf16, #tpu.memory_space<vmem>>, %arg8: memref<1x128xf32, #tpu.memory_space<vmem>>, %arg9: memref<1x128xf32, #tpu.memory_space<vmem>>, %arg10: memref<128x64xbf16, #tpu.memory_space<vmem>>, %arg11: memref<1x64xf32, #tpu.memory_space<vmem>>, %arg12: memref<1x64xf32, #tpu.memory_space<vmem>>, %arg13: memref<64x128xbf16, #tpu.memory_space<vmem>>, %arg14: memref<1x128xf32, #tpu.memory_space<vmem>>, %arg15: memref<16x128xf32, #tpu.memory_space<vmem>>) attributes {dimension_semantics = [], scalar_prefetch = 0 : i64, scratch_operands = 0 : i64, tpu.core_type = #tpu.core_type<tc>} {
    %c0 = arith.constant 0 : index
    %c0_0 = arith.constant 0 : index
    %0 = vector.load %arg0[%c0, %c0_0] : memref<16x512xf32, #tpu.memory_space<vmem>>, vector<16x512xf32>
    %1 = arith.truncf %0 : vector<16x512xf32> to vector<16x512xbf16>
    %c0_1 = arith.constant 0 : index
    %c0_2 = arith.constant 0 : index
    %2 = vector.load %arg1[%c0_1, %c0_2] : memref<512x512xbf16, #tpu.memory_space<vmem>>, vector<512x512xbf16>
    %cst = arith.constant dense<0.000000e+00> : vector<16x512xf32>
    %3 = tpu.matmul %1, %2, %cst {dimension_numbers = #tpu.dot_dimension_numbers<[1], [0], [0], [1], [0, 0, 1, 1], [], []>} : vector<16x512xbf16>, vector<512x512xbf16>, vector<16x512xf32> -> vector<16x512xf32>
    %cst_3 = arith.constant dense<0.000000e+00> : vector<512xf32>
    %4 = vector.multi_reduction <add>, %3, %cst_3 [0] : vector<16x512xf32> to vector<512xf32>
    %5 = vector.shape_cast %4 : vector<512xf32> to vector<1x512xf32>
    %cst_4 = arith.constant 1.600000e+01 : f32
    %6 = vector.broadcast %cst_4 : f32 to vector<1x512xf32>
    %7 = arith.divf %5, %6 : vector<1x512xf32>
    %8 = vector.broadcast %7 : vector<1x512xf32> to vector<16x512xf32>
    %9 = arith.subf %3, %8 : vector<16x512xf32>
    %10 = arith.mulf %9, %9 : vector<16x512xf32>
    %cst_5 = arith.constant dense<0.000000e+00> : vector<512xf32>
    %11 = vector.multi_reduction <add>, %10, %cst_5 [0] : vector<16x512xf32> to vector<512xf32>
    %12 = vector.shape_cast %11 : vector<512xf32> to vector<1x512xf32>
    %cst_6 = arith.constant 1.600000e+01 : f32
    %13 = vector.broadcast %cst_6 : f32 to vector<1x512xf32>
    %14 = arith.divf %12, %13 : vector<1x512xf32>
    %cst_7 = arith.constant 0.000000e+00 : f32
    %15 = vector.broadcast %cst_7 : f32 to vector<1x512xf32>
    %16 = arith.maximumf %14, %15 : vector<1x512xf32>
    %c0_8 = arith.constant 0 : index
    %c0_9 = arith.constant 0 : index
    %17 = vector.load %arg2[%c0_8, %c0_9] : memref<1x512xf32, #tpu.memory_space<vmem>>, vector<1x512xf32>
    %cst_10 = arith.constant 9.99999974E-6 : f32
    %18 = vector.broadcast %cst_10 : f32 to vector<1x512xf32>
    %19 = arith.addf %16, %18 : vector<1x512xf32>
    %20 = math.rsqrt %19 : vector<1x512xf32>
    %21 = arith.mulf %17, %20 : vector<1x512xf32>
    %22 = vector.broadcast %21 : vector<1x512xf32> to vector<16x512xf32>
    %23 = arith.mulf %9, %22 : vector<16x512xf32>
    %c0_11 = arith.constant 0 : index
    %c0_12 = arith.constant 0 : index
    %24 = vector.load %arg3[%c0_11, %c0_12] : memref<1x512xf32, #tpu.memory_space<vmem>>, vector<1x512xf32>
    %25 = vector.broadcast %24 : vector<1x512xf32> to vector<16x512xf32>
    %26 = arith.addf %23, %25 : vector<16x512xf32>
    %cst_13 = arith.constant 0.000000e+00 : f32
    %27 = vector.broadcast %cst_13 : f32 to vector<16x512xf32>
    %28 = arith.cmpf oge, %26, %27 : vector<16x512xf32>
    %cst_14 = arith.constant 2.000000e-01 : f32
    %29 = vector.broadcast %cst_14 : f32 to vector<16x512xf32>
    %30 = arith.mulf %29, %26 : vector<16x512xf32>
    %31 = arith.select %28, %26, %30 : vector<16x512xi1>, vector<16x512xf32>
    %32 = arith.truncf %31 : vector<16x512xf32> to vector<16x512xbf16>
    %c0_15 = arith.constant 0 : index
    %c0_16 = arith.constant 0 : index
    %33 = vector.load %arg4[%c0_15, %c0_16] : memref<512x256xbf16, #tpu.memory_space<vmem>>, vector<512x256xbf16>
    %cst_17 = arith.constant dense<0.000000e+00> : vector<16x256xf32>
    %34 = tpu.matmul %32, %33, %cst_17 {dimension_numbers = #tpu.dot_dimension_numbers<[1], [0], [0], [1], [0, 0, 1, 1], [], []>} : vector<16x512xbf16>, vector<512x256xbf16>, vector<16x256xf32> -> vector<16x256xf32>
    %cst_18 = arith.constant dense<0.000000e+00> : vector<256xf32>
    %35 = vector.multi_reduction <add>, %34, %cst_18 [0] : vector<16x256xf32> to vector<256xf32>
    %36 = vector.shape_cast %35 : vector<256xf32> to vector<1x256xf32>
    %cst_19 = arith.constant 1.600000e+01 : f32
    %37 = vector.broadcast %cst_19 : f32 to vector<1x256xf32>
    %38 = arith.divf %36, %37 : vector<1x256xf32>
    %39 = vector.broadcast %38 : vector<1x256xf32> to vector<16x256xf32>
    %40 = arith.subf %34, %39 : vector<16x256xf32>
    %41 = arith.mulf %40, %40 : vector<16x256xf32>
    %cst_20 = arith.constant dense<0.000000e+00> : vector<256xf32>
    %42 = vector.multi_reduction <add>, %41, %cst_20 [0] : vector<16x256xf32> to vector<256xf32>
    %43 = vector.shape_cast %42 : vector<256xf32> to vector<1x256xf32>
    %cst_21 = arith.constant 1.600000e+01 : f32
    %44 = vector.broadcast %cst_21 : f32 to vector<1x256xf32>
    %45 = arith.divf %43, %44 : vector<1x256xf32>
    %cst_22 = arith.constant 0.000000e+00 : f32
    %46 = vector.broadcast %cst_22 : f32 to vector<1x256xf32>
    %47 = arith.maximumf %45, %46 : vector<1x256xf32>
    %c0_23 = arith.constant 0 : index
    %c0_24 = arith.constant 0 : index
    %48 = vector.load %arg5[%c0_23, %c0_24] : memref<1x256xf32, #tpu.memory_space<vmem>>, vector<1x256xf32>
    %cst_25 = arith.constant 9.99999974E-6 : f32
    %49 = vector.broadcast %cst_25 : f32 to vector<1x256xf32>
    %50 = arith.addf %47, %49 : vector<1x256xf32>
    %51 = math.rsqrt %50 : vector<1x256xf32>
    %52 = arith.mulf %48, %51 : vector<1x256xf32>
    %53 = vector.broadcast %52 : vector<1x256xf32> to vector<16x256xf32>
    %54 = arith.mulf %40, %53 : vector<16x256xf32>
    %c0_26 = arith.constant 0 : index
    %c0_27 = arith.constant 0 : index
    %55 = vector.load %arg6[%c0_26, %c0_27] : memref<1x256xf32, #tpu.memory_space<vmem>>, vector<1x256xf32>
    %56 = vector.broadcast %55 : vector<1x256xf32> to vector<16x256xf32>
    %57 = arith.addf %54, %56 : vector<16x256xf32>
    %cst_28 = arith.constant 0.000000e+00 : f32
    %58 = vector.broadcast %cst_28 : f32 to vector<16x256xf32>
    %59 = arith.cmpf oge, %57, %58 : vector<16x256xf32>
    %cst_29 = arith.constant 2.000000e-01 : f32
    %60 = vector.broadcast %cst_29 : f32 to vector<16x256xf32>
    %61 = arith.mulf %60, %57 : vector<16x256xf32>
    %62 = arith.select %59, %57, %61 : vector<16x256xi1>, vector<16x256xf32>
    %63 = arith.truncf %62 : vector<16x256xf32> to vector<16x256xbf16>
    %c0_30 = arith.constant 0 : index
    %c0_31 = arith.constant 0 : index
    %64 = vector.load %arg7[%c0_30, %c0_31] : memref<256x128xbf16, #tpu.memory_space<vmem>>, vector<256x128xbf16>
    %cst_32 = arith.constant dense<0.000000e+00> : vector<16x128xf32>
    %65 = tpu.matmul %63, %64, %cst_32 {dimension_numbers = #tpu.dot_dimension_numbers<[1], [0], [0], [1], [0, 0, 1, 1], [], []>} : vector<16x256xbf16>, vector<256x128xbf16>, vector<16x128xf32> -> vector<16x128xf32>
    %cst_33 = arith.constant dense<0.000000e+00> : vector<128xf32>
    %66 = vector.multi_reduction <add>, %65, %cst_33 [0] : vector<16x128xf32> to vector<128xf32>
    %67 = vector.shape_cast %66 : vector<128xf32> to vector<1x128xf32>
    %cst_34 = arith.constant 1.600000e+01 : f32
    %68 = vector.broadcast %cst_34 : f32 to vector<1x128xf32>
    %69 = arith.divf %67, %68 : vector<1x128xf32>
    %70 = vector.broadcast %69 : vector<1x128xf32> to vector<16x128xf32>
    %71 = arith.subf %65, %70 : vector<16x128xf32>
    %72 = arith.mulf %71, %71 : vector<16x128xf32>
    %cst_35 = arith.constant dense<0.000000e+00> : vector<128xf32>
    %73 = vector.multi_reduction <add>, %72, %cst_35 [0] : vector<16x128xf32> to vector<128xf32>
    %74 = vector.shape_cast %73 : vector<128xf32> to vector<1x128xf32>
    %cst_36 = arith.constant 1.600000e+01 : f32
    %75 = vector.broadcast %cst_36 : f32 to vector<1x128xf32>
    %76 = arith.divf %74, %75 : vector<1x128xf32>
    %cst_37 = arith.constant 0.000000e+00 : f32
    %77 = vector.broadcast %cst_37 : f32 to vector<1x128xf32>
    %78 = arith.maximumf %76, %77 : vector<1x128xf32>
    %c0_38 = arith.constant 0 : index
    %c0_39 = arith.constant 0 : index
    %79 = vector.load %arg8[%c0_38, %c0_39] : memref<1x128xf32, #tpu.memory_space<vmem>>, vector<1x128xf32>
    %cst_40 = arith.constant 9.99999974E-6 : f32
    %80 = vector.broadcast %cst_40 : f32 to vector<1x128xf32>
    %81 = arith.addf %78, %80 : vector<1x128xf32>
    %82 = math.rsqrt %81 : vector<1x128xf32>
    %83 = arith.mulf %79, %82 : vector<1x128xf32>
    %84 = vector.broadcast %83 : vector<1x128xf32> to vector<16x128xf32>
    %85 = arith.mulf %71, %84 : vector<16x128xf32>
    %c0_41 = arith.constant 0 : index
    %c0_42 = arith.constant 0 : index
    %86 = vector.load %arg9[%c0_41, %c0_42] : memref<1x128xf32, #tpu.memory_space<vmem>>, vector<1x128xf32>
    %87 = vector.broadcast %86 : vector<1x128xf32> to vector<16x128xf32>
    %88 = arith.addf %85, %87 : vector<16x128xf32>
    %cst_43 = arith.constant 0.000000e+00 : f32
    %89 = vector.broadcast %cst_43 : f32 to vector<16x128xf32>
    %90 = arith.cmpf oge, %88, %89 : vector<16x128xf32>
    %cst_44 = arith.constant 2.000000e-01 : f32
    %91 = vector.broadcast %cst_44 : f32 to vector<16x128xf32>
    %92 = arith.mulf %91, %88 : vector<16x128xf32>
    %93 = arith.select %90, %88, %92 : vector<16x128xi1>, vector<16x128xf32>
    %94 = arith.truncf %93 : vector<16x128xf32> to vector<16x128xbf16>
    %c0_45 = arith.constant 0 : index
    %c0_46 = arith.constant 0 : index
    %95 = vector.load %arg10[%c0_45, %c0_46] : memref<128x64xbf16, #tpu.memory_space<vmem>>, vector<128x64xbf16>
    %cst_47 = arith.constant dense<0.000000e+00> : vector<16x64xf32>
    %96 = tpu.matmul %94, %95, %cst_47 {dimension_numbers = #tpu.dot_dimension_numbers<[1], [0], [0], [1], [0, 0, 1, 1], [], []>} : vector<16x128xbf16>, vector<128x64xbf16>, vector<16x64xf32> -> vector<16x64xf32>
    %cst_48 = arith.constant dense<0.000000e+00> : vector<64xf32>
    %97 = vector.multi_reduction <add>, %96, %cst_48 [0] : vector<16x64xf32> to vector<64xf32>
    %98 = vector.shape_cast %97 : vector<64xf32> to vector<1x64xf32>
    %cst_49 = arith.constant 1.600000e+01 : f32
    %99 = vector.broadcast %cst_49 : f32 to vector<1x64xf32>
    %100 = arith.divf %98, %99 : vector<1x64xf32>
    %101 = vector.broadcast %100 : vector<1x64xf32> to vector<16x64xf32>
    %102 = arith.subf %96, %101 : vector<16x64xf32>
    %103 = arith.mulf %102, %102 : vector<16x64xf32>
    %cst_50 = arith.constant dense<0.000000e+00> : vector<64xf32>
    %104 = vector.multi_reduction <add>, %103, %cst_50 [0] : vector<16x64xf32> to vector<64xf32>
    %105 = vector.shape_cast %104 : vector<64xf32> to vector<1x64xf32>
    %cst_51 = arith.constant 1.600000e+01 : f32
    %106 = vector.broadcast %cst_51 : f32 to vector<1x64xf32>
    %107 = arith.divf %105, %106 : vector<1x64xf32>
    %cst_52 = arith.constant 0.000000e+00 : f32
    %108 = vector.broadcast %cst_52 : f32 to vector<1x64xf32>
    %109 = arith.maximumf %107, %108 : vector<1x64xf32>
    %c0_53 = arith.constant 0 : index
    %c0_54 = arith.constant 0 : index
    %110 = vector.load %arg11[%c0_53, %c0_54] : memref<1x64xf32, #tpu.memory_space<vmem>>, vector<1x64xf32>
    %cst_55 = arith.constant 9.99999974E-6 : f32
    %111 = vector.broadcast %cst_55 : f32 to vector<1x64xf32>
    %112 = arith.addf %109, %111 : vector<1x64xf32>
    %113 = math.rsqrt %112 : vector<1x64xf32>
    %114 = arith.mulf %110, %113 : vector<1x64xf32>
    %115 = vector.broadcast %114 : vector<1x64xf32> to vector<16x64xf32>
    %116 = arith.mulf %102, %115 : vector<16x64xf32>
    %c0_56 = arith.constant 0 : index
    %c0_57 = arith.constant 0 : index
    %117 = vector.load %arg12[%c0_56, %c0_57] : memref<1x64xf32, #tpu.memory_space<vmem>>, vector<1x64xf32>
    %118 = vector.broadcast %117 : vector<1x64xf32> to vector<16x64xf32>
    %119 = arith.addf %116, %118 : vector<16x64xf32>
    %cst_58 = arith.constant 0.000000e+00 : f32
    %120 = vector.broadcast %cst_58 : f32 to vector<16x64xf32>
    %121 = arith.cmpf oge, %119, %120 : vector<16x64xf32>
    %cst_59 = arith.constant 2.000000e-01 : f32
    %122 = vector.broadcast %cst_59 : f32 to vector<16x64xf32>
    %123 = arith.mulf %122, %119 : vector<16x64xf32>
    %124 = arith.select %121, %119, %123 : vector<16x64xi1>, vector<16x64xf32>
    %125 = arith.truncf %124 : vector<16x64xf32> to vector<16x64xbf16>
    %c0_60 = arith.constant 0 : index
    %c0_61 = arith.constant 0 : index
    %126 = vector.load %arg13[%c0_60, %c0_61] : memref<64x128xbf16, #tpu.memory_space<vmem>>, vector<64x128xbf16>
    %cst_62 = arith.constant dense<0.000000e+00> : vector<16x128xf32>
    %127 = tpu.matmul %125, %126, %cst_62 {dimension_numbers = #tpu.dot_dimension_numbers<[1], [0], [0], [1], [0, 0, 1, 1], [], []>} : vector<16x64xbf16>, vector<64x128xbf16>, vector<16x128xf32> -> vector<16x128xf32>
    %c0_63 = arith.constant 0 : index
    %c0_64 = arith.constant 0 : index
    %128 = vector.load %arg14[%c0_63, %c0_64] : memref<1x128xf32, #tpu.memory_space<vmem>>, vector<1x128xf32>
    %129 = vector.broadcast %128 : vector<1x128xf32> to vector<16x128xf32>
    %130 = arith.addf %127, %129 : vector<16x128xf32>
    %131 = arith.negf %130 : vector<16x128xf32>
    %132 = math.exp %131 : vector<16x128xf32>
    %cst_65 = arith.constant 1.000000e+00 : f32
    %133 = vector.broadcast %cst_65 : f32 to vector<16x128xf32>
    %134 = arith.addf %133, %132 : vector<16x128xf32>
    %135 = arith.divf %133, %134 : vector<16x128xf32>
    %c0_66 = arith.constant 0 : index
    %c0_67 = arith.constant 0 : index
    %136 = vector.load %arg15[%c0_66, %c0_67] : memref<16x128xf32, #tpu.memory_space<vmem>>, vector<16x128xf32>
    tpu.vector_store %arg15[%c0_66, %c0_67], %135 {strides = array<i32>} : memref<16x128xf32, #tpu.memory_space<vmem>>, vector<16x128xf32>,
    return
  }
}

</mosaic_0001>

<bundles_post_ra>
// kernel: discriminator_forward_train.1
= control target key start
LH: loop header
LB: loop body
LE: loop exit
PB: predicated region body
PF: predicated region fallthrough
CT: control target
= control target key end

     0   :  { %20 = vsyncpa [#allocation3], 0  ;;  %s4045_s0 = inlined_call_operand.vmem [shape: f32[16,512], index: 0, kind: input, shape index: {}]   ;;  %s4046_s1 = inlined_call_operand.hbm [shape: bf16[512,512], index: 1, kind: input, shape index: {}]   ;;  %s4047_s2 = inlined_call_operand.hbm [shape: f32[1,512], index: 2, kind: input, shape index: {}]   ;;  %s4048_s3 = inlined_call_operand.hbm [shape: f32[1,512], index: 3, kind: input, shape index: {}]   ;;  %s4049_s4 = inlined_call_operand.hbm [shape: bf16[512,256], index: 4, kind: input, shape index: {}]   ;;  %s4050_s5 = inlined_call_operand.vmem [shape: f32[1,256], index: 5, kind: input, shape index: {}]   ;;  %s4051_s6 = inlined_call_operand.vmem [shape: f32[1,256], index: 6, kind: input, shape index: {}]   ;;  %s4052_s7 = inlined_call_operand.hbm [shape: bf16[256,128], index: 7, kind: input, shape index: {}]   ;;  %s4053_s8 = inlined_call_operand.vmem [shape: f32[1,128], index: 8, kind: input, shape index: {}]   ;;  %s4054_s9 = inlined_call_operand.vmem [shape: f32[1,128], index: 9, kind: input, shape index: {}]   ;;  %s4055_s10 = inlined_call_operand.vmem [shape: bf16[128,64], index: 10, kind: input, shape index: {}]   ;;  %s4056_s11 = inlined_call_operand.vmem [shape: f32[1,64], index: 11, kind: input, shape index: {}]   ;;  %s4057_s12 = inlined_call_operand.vmem [shape: f32[1,64], index: 12, kind: input, shape index: {}]   ;;  %s4058_s13 = inlined_call_operand.vmem [shape: bf16[64,128], index: 13, kind: input, shape index: {}]   ;;  %s4059_s14 = inlined_call_operand.vmem [shape: f32[1,128], index: 14, kind: input, shape index: {}]   ;;  %s4060_s15 = inlined_call_operand.vmem [shape: f32[16,128], index: 15, kind: output, shape index: {}]  }
   0x1   :  { %21 = vsyncpa [#allocation5], 0  ;;  %s43_s20 = sshll.u32 %s4047_s2, 4  ;;  %s44_s20 = int_to_ptr.hbm [resolvable:$true] %s43_s20 }
   0x2   :  { %22 = vsyncpa [#allocation8], 0  ;;  %s3656_s21 = smov [#allocation4]   ;;  %s64_s25 = sshll.u32 %s4049_s4, 4  ;;  %s65_s25 = int_to_ptr.hbm [resolvable:$true] %s64_s25 }
   0x3   :  { %s45_s22 = sshll.u32 %s3656_s21, 4  ;;  %s3657_s26 = smov [#allocation7]   ;;  %s46_s22 = int_to_ptr.vmem [resolvable:$true] %s45_s22 }
   0x4   :  { %48 = dma.hbm_to_vmem [thread:$0]  %s44_s20, 64, %s46_s22, [#allocation5]  }
   0x5   :  { %s66_s27 = sshll.u32 %s3657_s26, 4  ;;  %s3658_s28 = smov 128   ;;  %s67_s27 = int_to_ptr.vmem [resolvable:$true] %s66_s27 }
   0x6   :  { %s3659_s29 = smov 8   ;;  %s29_s2 = sshll.u32 %s4046_s1, 4  ;;  %s30_s2 = int_to_ptr.hbm [resolvable:$true] %s29_s2 }
   0x7   :  { %72 = dma.hbm_to_vmem [thread:$0]  %s65_s25, 8192, %s67_s27, [#allocation8], %s3658_s28, %s3658_s28, %s3659_s29  }
   0x8   :  { %s3660_s17 = smov [#allocation2]   ;;  %s54_s4 = sshll.u32 %s4048_s3, 4  ;;  %s55_s4 = int_to_ptr.hbm [resolvable:$true] %s54_s4 }
   0x9   :  { %s31_s18 = sshll.u32 %s3660_s17, 4  ;;  %s3661_s20 = smov 256   ;;  %s32_s18 = int_to_ptr.vmem [resolvable:$true] %s31_s18 }
   0xa   :  { %s3662_s22 = smov 16   ;;  %s3663_s23 = smov [#allocation6]  }
   0xb   :  { %37 = dma.hbm_to_vmem [thread:$0]  %s30_s2, 16384, %s32_s18, [#allocation3], %s3661_s20, %s3661_s20, %s3662_s22  }
   0xc   :  { %s56_s24 = sshll.u32 %s3663_s23, 4  ;;  %s81_s27 = sshll.u32 %s4052_s7, 4  ;;  %s57_s24 = int_to_ptr.vmem [resolvable:$true] %s56_s24  ;;  %s82_s27 = int_to_ptr.hbm [resolvable:$true] %s81_s27 }
   0xd   :  { %59 = dma.hbm_to_vmem [thread:$0]  %s55_s4, 64, %s57_s24, [#allocation5]  }
   0xe   :  { %s3664_s1 = smov [#allocation9]   ;;  %s3665_s29 = smov 64  }
   0xf   :  { %s83_s28 = sshll.u32 %s3664_s1, 4  ;;  %s3666_s30 = smov 4   ;;  %s84_s28 = int_to_ptr.vmem [resolvable:$true] %s83_s28 }
  0x10   :  { %89 = dma.hbm_to_vmem [thread:$0]  %s82_s27, 2048, %s84_s28, [#allocation8], %s3665_s29, %s3665_s29, %s3666_s30  }
  0x11   :  { %3650 = dma.done.wait [#allocation3], 16384  }
  0x12   :  { %3651 = vsyncadd [#allocation3], 4294950912 }
  0x13   :  { %3652 = dma.done.wait [#allocation5], 128  }
  0x14   :  { %3653 = vsyncadd [#allocation5], 4294967168 }
  0x15   :  { %3654 = dma.done.wait [#allocation8], 10240  }
  0x16   :  { %3655 = vsyncadd [#allocation8], 4294957056  ;;  %v2500_v0 = vld [vmem:[#allocation2 + $0xe0] sm:$0xf]  ;;  %v3299_v1 = vld [vmem:[#allocation2 + $0xec] sm:$0xf0] }
  0x17   :  { %v2628_v2 = vld [vmem:[#allocation2 + $0x1e0] sm:$0xf]  ;;  %v2501_v3 = vor.u32 %v3299_v1, %v2500_v0  ;;  %v3331_v4 = vld [vmem:[#allocation2 + $0x1ec] sm:$0xf0]  ;;  %vm1272_vm8 = vcmask 1040384   ;;  %vm1274_vm13 = vcmask 1042434  }
  0x18   :  { %v2756_v5 = vld [vmem:[#allocation2 + $0x2e0] sm:$0xf]  ;;  %v3363_v6 = vld [vmem:[#allocation2 + $0x2ec] sm:$0xf0]  ;;  %v2629_v7 = vor.u32 %v3331_v4, %v2628_v2  ;;  %vm1276_vm15 = vcmask 1041408  }
  0x19   :  { %v2757_v8 = vor.u32 %v3363_v6, %v2756_v5  ;;  %v2884_v9 = vld [vmem:[#allocation2 + $0x3e0] sm:$0xf]  ;;  %v3395_v10 = vld [vmem:[#allocation2 + $0x3ec] sm:$0xf0]  ;;  %905 = vmatpush.bf16.msra.mxu0 %v2501_v3 }
  0x1a   :  { %v2484_v11 = vld [vmem:[#allocation2 + $0xc0] sm:$0xf]  ;;  %v2885_v12 = vor.u32 %v3395_v10, %v2884_v9  ;;  %v3295_v13 = vld [vmem:[#allocation2 + $0xcc] sm:$0xf0]  ;;  %919 = vmatpush.bf16.msra.mxu1 %v2629_v7 }
  0x1b   :  { %v2612_v14 = vld [vmem:[#allocation2 + $0x1c0] sm:$0xf]  ;;  %v3327_v15 = vld [vmem:[#allocation2 + $0x1cc] sm:$0xf0]  ;;  %933 = vmatpush.bf16.msra.mxu2 %v2757_v8  ;;  %v2485_v16 = vor.u32 %v3295_v13, %v2484_v11 }
  0x1c   :  { %v2613_v17 = vor.u32 %v3327_v15, %v2612_v14  ;;  %v2740_v18 = vld [vmem:[#allocation2 + $0x2c0] sm:$0xf]  ;;  %v3359_v19 = vld [vmem:[#allocation2 + $0x2cc] sm:$0xf0]  ;;  %947 = vmatpush.bf16.msra.mxu3 %v2885_v12 }
  0x1d   :  { %v2868_v20 = vld [vmem:[#allocation2 + $0x3c0] sm:$0xf]  ;;  %v2741_v21 = vor.u32 %v3359_v19, %v2740_v18  ;;  %v3391_v22 = vld [vmem:[#allocation2 + $0x3cc] sm:$0xf0]  ;;  %906 = vmatpush.bf16.msra.mxu0 %v2485_v16 }
  0x1e   :  { %v2468_v23 = vld [vmem:[#allocation2 + $0xa0] sm:$0xf]  ;;  %v3291_v24 = vld [vmem:[#allocation2 + $0xac] sm:$0xf0]  ;;  %v2869_v25 = vor.u32 %v3391_v22, %v2868_v20  ;;  %920 = vmatpush.bf16.msra.mxu1 %v2613_v17 }
  0x1f   :  { %v2596_v26 = vld [vmem:[#allocation2 + $0x1a0] sm:$0xf]  ;;  %v3323_v27 = vld [vmem:[#allocation2 + $0x1ac] sm:$0xf0]  ;;  %v2469_v29 = vor.u32 %v3291_v24, %v2468_v23  ;;  %934 = vmatpush.bf16.msra.mxu2 %v2741_v21 }
  0x20   :  { %v2724_v28 = vld [vmem:[#allocation2 + $0x2a0] sm:$0xf]  ;;  %v3355_v30 = vld [vmem:[#allocation2 + $0x2ac] sm:$0xf0]  ;;  %v2597_v33 = vor.u32 %v3323_v27, %v2596_v26  ;;  %948 = vmatpush.bf16.msra.mxu3 %v2869_v25  ;;  %v3297_v27 = vld [vmem:[#allocation2 + $0xe4] sm:$0xf] }
  0x21   :  { %v2852_v31 = vld [vmem:[#allocation2 + $0x3a0] sm:$0xf]  ;;  %v3387_v32 = vld [vmem:[#allocation2 + $0x3ac] sm:$0xf0]  ;;  %v2725_v34 = vor.u32 %v3355_v30, %v2724_v28  ;;  %907 = vmatpush.bf16.msra.mxu0 %v2469_v29  ;;  %v2502_v29 = vld [vmem:[#allocation2 + $0xf0] sm:$0xf0] }
  0x22   :  { %v2452_v35 = vld [vmem:[#allocation2 + $0x80] sm:$0xf]  ;;  %v3287_v36 = vld [vmem:[#allocation2 + $0x8c] sm:$0xf0]  ;;  %v2853_v38 = vor.u32 %v3387_v32, %v2852_v31  ;;  %921 = vmatpush.bf16.msra.mxu1 %v2597_v33  ;;  %v3329_v30 = vld [vmem:[#allocation2 + $0x1e4] sm:$0xf] }
  0x23   :  { %v2580_v37 = vld [vmem:[#allocation2 + $0x180] sm:$0xf]  ;;  %v3319_v39 = vld [vmem:[#allocation2 + $0x18c] sm:$0xf0]  ;;  %v2453_v44 = vor.u32 %v3287_v36, %v2452_v35  ;;  %935 = vmatpush.bf16.msra.mxu2 %v2725_v34  ;;  %v2630_v31 = vld [vmem:[#allocation2 + $0x1f0] sm:$0xf0] }
  0x24   :  { %v2708_v40 = vld [vmem:[#allocation2 + $0x280] sm:$0xf]  ;;  %v3351_v41 = vld [vmem:[#allocation2 + $0x28c] sm:$0xf0]  ;;  %v2581_v45 = vor.u32 %v3319_v39, %v2580_v37  ;;  %949 = vmatpush.bf16.msra.mxu3 %v2853_v38  ;;  %v3361_v32 = vld [vmem:[#allocation2 + $0x2e4] sm:$0xf] }
  0x25   :  { %v2836_v42 = vld [vmem:[#allocation2 + $0x380] sm:$0xf]  ;;  %v3383_v43 = vld [vmem:[#allocation2 + $0x38c] sm:$0xf0]  ;;  %v2709_v46 = vor.u32 %v3351_v41, %v2708_v40  ;;  %908 = vmatpush.bf16.msra.mxu0 %v2453_v44  ;;  %v2758_v33 = vld [vmem:[#allocation2 + $0x2f0] sm:$0xf0] }
  0x26   :  { %v2436_v47 = vld [vmem:[#allocation2 + $0x60] sm:$0xf]  ;;  %v3283_v48 = vld [vmem:[#allocation2 + $0x6c] sm:$0xf0]  ;;  %v2837_v50 = vor.u32 %v3383_v43, %v2836_v42  ;;  %922 = vmatpush.bf16.msra.mxu1 %v2581_v45  ;;  %v3393_v34 = vld [vmem:[#allocation2 + $0x3e4] sm:$0xf]  ;;  %v2505_v45 = vor.u32 %v3297_v27, %v2502_v29 }
  0x27   :  { %v2564_v49 = vld [vmem:[#allocation2 + $0x160] sm:$0xf]  ;;  %v3315_v51 = vld [vmem:[#allocation2 + $0x16c] sm:$0xf0]  ;;  %v2437_v56 = vor.u32 %v3283_v48, %v2436_v47  ;;  %936 = vmatpush.bf16.msra.mxu2 %v2709_v46  ;;  %v2886_v36 = vld [vmem:[#allocation2 + $0x3f0] sm:$0xf0] }
  0x28   :  { %v2692_v52 = vld [vmem:[#allocation2 + $0x260] sm:$0xf]  ;;  %v3347_v53 = vld [vmem:[#allocation2 + $0x26c] sm:$0xf0]  ;;  %v2565_v57 = vor.u32 %v3315_v51, %v2564_v49  ;;  %950 = vmatpush.bf16.msra.mxu3 %v2837_v50  ;;  %v128_v41 = vld [vmem:[%s4045_s0 + $0x18] sm:$0xff]  ;;  %v2633_v49 = vor.u32 %v3329_v30, %v2630_v31  ;;  %v2761_v50 = vor.u32 %v3361_v32, %v2758_v33 }
  0x29   :  { %v2820_v54 = vld [vmem:[#allocation2 + $0x360] sm:$0xf]  ;;  %v3379_v55 = vld [vmem:[#allocation2 + $0x36c] sm:$0xf0]  ;;  %v2693_v58 = vor.u32 %v3347_v53, %v2692_v52  ;;  %909 = vmatpush.bf16.msra.mxu0 %v2437_v56  ;;  %v132_v42 = vld [vmem:[%s4045_s0 + $0x38] sm:$0xff] }
  0x2a   :  { %v2420_v59 = vld [vmem:[#allocation2 + $0x40] sm:$0xf]  ;;  %v3279_v60 = vld [vmem:[#allocation2 + $0x4c] sm:$0xf0]  ;;  %v2821_v62 = vor.u32 %v3379_v55, %v2820_v54  ;;  %923 = vmatpush.bf16.msra.mxu1 %v2565_v57  ;;  %v3293_v43 = vld [vmem:[#allocation2 + $0xc4] sm:$0xf]  ;;  %v2889_v54 = vor.u32 %v3393_v34, %v2886_v36 }
  0x2b   :  { %v2548_v61 = vld [vmem:[#allocation2 + $0x140] sm:$0xf]  ;;  %v3311_v63 = vld [vmem:[#allocation2 + $0x14c] sm:$0xf0]  ;;  %v2421_v4 = vor.u32 %v3279_v60, %v2420_v59  ;;  %937 = vmatpush.bf16.msra.mxu2 %v2693_v58  ;;  %v2486_v46 = vld [vmem:[#allocation2 + $0xd0] sm:$0xf0]  ;;  %v3789_v59 = vpack.c.bf16 %v132_v42, %v128_v41 }
  0x2c   :  { %v2676_v0 = vld [vmem:[#allocation2 + $0x240] sm:$0xf]  ;;  %v3343_v1 = vld [vmem:[#allocation2 + $0x24c] sm:$0xf0]  ;;  %v2549_v6 = vor.u32 %v3311_v63, %v2548_v61  ;;  %951 = vmatpush.bf16.msra.mxu3 %v2821_v62  ;;  %v3325_v51 = vld [vmem:[#allocation2 + $0x1c4] sm:$0xf]  ;;  %v2489_v63 = vor.u32 %v3293_v43, %v2486_v46 }
  0x2d   :  { %v2804_v2 = vld [vmem:[#allocation2 + $0x340] sm:$0xf]  ;;  %v3375_v3 = vld [vmem:[#allocation2 + $0x34c] sm:$0xf0]  ;;  %v2677_v7 = vor.u32 %v3343_v1, %v2676_v0  ;;  %910 = vmatpush.bf16.msra.mxu0 %v2421_v4  ;;  %v126_v52 = vld [vmem:[%s4045_s0 + $0x8] sm:$0xff] }
  0x2e   :  { %v2404_v5 = vld [vmem:[#allocation2 + $0x20] sm:$0xf]  ;;  %v3275_v8 = vld [vmem:[#allocation2 + $0x2c] sm:$0xf0]  ;;  %v2805_v11 = vor.u32 %v3375_v3, %v2804_v2  ;;  %924 = vmatpush.bf16.msra.mxu1 %v2549_v6  ;;  %v130_v53 = vld [vmem:[%s4045_s0 + $0x28] sm:$0xff] }
  0x2f   :  { %v2532_v9 = vld [vmem:[#allocation2 + $0x120] sm:$0xf]  ;;  %v3307_v10 = vld [vmem:[#allocation2 + $0x12c] sm:$0xf0]  ;;  %v2405_v18 = vor.u32 %v3275_v8, %v2404_v5  ;;  %938 = vmatpush.bf16.msra.mxu2 %v2677_v7  ;;  %v2614_v56 = vld [vmem:[#allocation2 + $0x1d0] sm:$0xf0]  ;;  %v3793_v0 = vpack.c.bf16 %v130_v53, %v126_v52 }
  0x30   :  { %v2660_v12 = vld [vmem:[#allocation2 + $0x220] sm:$0xf]  ;;  %v3339_v13 = vld [vmem:[#allocation2 + $0x22c] sm:$0xf0]  ;;  %v2533_v23 = vor.u32 %v3307_v10, %v2532_v9  ;;  %952 = vmatpush.bf16.msra.mxu3 %v2805_v11  ;;  %v3357_v57 = vld [vmem:[#allocation2 + $0x2c4] sm:$0xf]  ;;  %v2617_v1 = vor.u32 %v3325_v51, %v2614_v56 }
  0x31   :  { %v2788_v14 = vld [vmem:[#allocation2 + $0x320] sm:$0xf]  ;;  %v3371_v15 = vld [vmem:[#allocation2 + $0x32c] sm:$0xf0]  ;;  %v2661_v24 = vor.u32 %v3339_v13, %v2660_v12  ;;  %911 = vmatpush.bf16.msra.mxu0 %v2405_v18  ;;  %v2742_v58 = vld [vmem:[#allocation2 + $0x2d0] sm:$0xf0] }
  0x32   :  { %v2388_v16 = vld [vmem:[#allocation2] sm:$0xf]  ;;  %v3271_v17 = vld [vmem:[#allocation2 + $0xc] sm:$0xf0]  ;;  %v2789_v28 = vor.u32 %v3371_v15, %v2788_v14  ;;  %925 = vmatpush.bf16.msra.mxu1 %v2533_v23  ;;  %v3389_v60 = vld [vmem:[#allocation2 + $0x3c4] sm:$0xf]  ;;  %v2745_v2 = vor.u32 %v3357_v57, %v2742_v58 }
  0x33   :  { %v2516_v19 = vld [vmem:[#allocation2 + $0x100] sm:$0xf]  ;;  %v3303_v20 = vld [vmem:[#allocation2 + $0x10c] sm:$0xf0]  ;;  %v2389_v35 = vor.u32 %v3271_v17, %v2388_v16  ;;  %939 = vmatpush.bf16.msra.mxu2 %v2661_v24  ;;  %v2870_v61 = vld [vmem:[#allocation2 + $0x3d0] sm:$0xf0] }
  0x34   :  { %v2644_v21 = vld [vmem:[#allocation2 + $0x200] sm:$0xf]  ;;  %v3335_v22 = vld [vmem:[#allocation2 + $0x20c] sm:$0xf0]  ;;  %v2517_v39 = vor.u32 %v3303_v20, %v2516_v19  ;;  %953 = vmatpush.bf16.msra.mxu3 %v2789_v28  ;;  %v3289_v3 = vld [vmem:[#allocation2 + $0xa4] sm:$0xf]  ;;  %v2873_v6 = vor.u32 %v3389_v60, %v2870_v61 }
  0x35   :  { %v2772_v25 = vld [vmem:[#allocation2 + $0x300] sm:$0xf]  ;;  %v3367_v26 = vld [vmem:[#allocation2 + $0x30c] sm:$0xf0]  ;;  %v2645_v40 = vor.u32 %v3335_v22, %v2644_v21  ;;  %912 = vmatpush.bf16.msra.mxu0 %v2389_v35  ;;  %v2470_v4 = vld [vmem:[#allocation2 + $0xb0] sm:$0xf0] }
  0x36   :  { %v127_v37 = vld [vmem:[%s4045_s0 + $0x10] sm:$0xff]  ;;  %v2773_v44 = vor.u32 %v3367_v26, %v2772_v25  ;;  %v125_v47 = vld [vmem:[%s4045_s0] sm:$0xff]  ;;  %926 = vmatpush.bf16.msra.mxu1 %v2517_v39  ;;  %v2473_v12 = vor.u32 %v3289_v3, %v2470_v4 }
  0x37   :  { %v131_v38 = vld [vmem:[%s4045_s0 + $0x30] sm:$0xff]  ;;  %v129_v48 = vld [vmem:[%s4045_s0 + $0x20] sm:$0xff]  ;;  %940 = vmatpush.bf16.msra.mxu2 %v2645_v40 }
  0x38   :  { %v3787_v55 = vpack.c.bf16 %v131_v38, %v127_v37  ;;  %v3791_v62 = vpack.c.bf16 %v129_v48, %v125_v47  ;;  %954 = vmatpush.bf16.msra.mxu3 %v2773_v44  ;;  %v3321_v5 = vld [vmem:[#allocation2 + $0x1a4] sm:$0xf]  ;;  %v2598_v7 = vld [vmem:[#allocation2 + $0x1b0] sm:$0xf0] }
  0x39   :  { %961 = vmatpush.bf16.msrb.mxu0 %v2505_v45  ;;  %v3353_v8 = vld [vmem:[#allocation2 + $0x2a4] sm:$0xf]  ;;  %v2726_v9 = vld [vmem:[#allocation2 + $0x2b0] sm:$0xf0]  ;;  %927 = vmatmul.bf16.vlgmr.msra.gmra.mxu1 %v3793_v0  ;;  %v2601_v13 = vor.u32 %v3321_v5, %v2598_v7 }
  0x3a   :  { %975 = vmatpush.bf16.msrb.mxu1 %v2633_v49  ;;  %941 = vmatmul.bf16.vlgmr.msra.gmra.mxu2 %v3787_v55  ;;  %v3385_v10 = vld [vmem:[#allocation2 + $0x3a4] sm:$0xf]  ;;  %v2854_v11 = vld [vmem:[#allocation2 + $0x3b0] sm:$0xf0]  ;;  %v2729_v14 = vor.u32 %v3353_v8, %v2726_v9 }
  0x3b   :  { %989 = vmatpush.bf16.msrb.mxu2 %v2761_v50  ;;  %955 = vmatmul.bf16.vlgmr.msra.gmra.mxu3 %v3789_v59  ;;  %v3285_v15 = vld [vmem:[#allocation2 + $0x84] sm:$0xf]  ;;  %v2454_v16 = vld [vmem:[#allocation2 + $0x90] sm:$0xf0]  ;;  %v2857_v18 = vor.u32 %v3385_v10, %v2854_v11 }
  0x3c   :  { %1003 = vmatpush.bf16.msrb.mxu3 %v2889_v54  ;;  %913 = vmatmul.bf16.vlgmr.msra.gmra.mxu0 %v3791_v62  ;;  %v3317_v17 = vld [vmem:[#allocation2 + $0x184] sm:$0xf]  ;;  %v2582_v19 = vld [vmem:[#allocation2 + $0x190] sm:$0xf0]  ;;  %v2457_v24 = vor.u32 %v3285_v15, %v2454_v16  ;;  %v3332_v16 = vld [vmem:[#allocation2 + $0x1f4] sm:$0xf0] }
  0x3d   :  { %962 = vmatpush.bf16.msrb.mxu0 %v2489_v63  ;;  %v3349_v20 = vld [vmem:[#allocation2 + $0x284] sm:$0xf]  ;;  %v2710_v21 = vld [vmem:[#allocation2 + $0x290] sm:$0xf0]  ;;  %v2585_v25 = vor.u32 %v3317_v17, %v2582_v19  ;;  %v2764_v17 = vld [vmem:[#allocation2 + $0x2e8] sm:$0xf] }
  0x3e   :  { %976 = vmatpush.bf16.msrb.mxu1 %v2617_v1  ;;  %v3381_v22 = vld [vmem:[#allocation2 + $0x384] sm:$0xf]  ;;  %v2838_v23 = vld [vmem:[#allocation2 + $0x390] sm:$0xf0]  ;;  %v2713_v26 = vor.u32 %v3349_v20, %v2710_v21  ;;  %v2892_v21 = vld [vmem:[#allocation2 + $0x3e8] sm:$0xf] }
  0x3f   :  { %990 = vmatpush.bf16.msrb.mxu2 %v2745_v2  ;;  %v3281_v27 = vld [vmem:[#allocation2 + $0x64] sm:$0xf]  ;;  %v2438_v28 = vld [vmem:[#allocation2 + $0x70] sm:$0xf0]  ;;  %v2841_v30 = vor.u32 %v3381_v22, %v2838_v23  ;;  %v3396_v22 = vld [vmem:[#allocation2 + $0x3f4] sm:$0xf0] }
  0x40   :  { %1004 = vmatpush.bf16.msrb.mxu3 %v2873_v6  ;;  %v3313_v29 = vld [vmem:[#allocation2 + $0x164] sm:$0xf]  ;;  %v2566_v31 = vld [vmem:[#allocation2 + $0x170] sm:$0xf0]  ;;  %v2441_v36 = vor.u32 %v3281_v27, %v2438_v28  ;;  %v2492_v27 = vld [vmem:[#allocation2 + $0xc8] sm:$0xf] }
  0x41   :  { %963 = vmatpush.bf16.msrb.mxu0 %v2473_v12  ;;  %v3345_v32 = vld [vmem:[#allocation2 + $0x264] sm:$0xf]  ;;  %v2694_v33 = vld [vmem:[#allocation2 + $0x270] sm:$0xf0]  ;;  %v2569_v37 = vor.u32 %v3313_v29, %v2566_v31  ;;  %v2508_v12 = vld [vmem:[#allocation2 + $0xe8] sm:$0xf] }
  0x42   :  { %977 = vmatpush.bf16.msrb.mxu1 %v2601_v13  ;;  %v3377_v34 = vld [vmem:[#allocation2 + $0x364] sm:$0xf]  ;;  %v2822_v35 = vld [vmem:[#allocation2 + $0x370] sm:$0xf0]  ;;  %v2697_v38 = vor.u32 %v3345_v32, %v2694_v33  ;;  %v3300_v13 = vld [vmem:[#allocation2 + $0xf4] sm:$0xf0] }
  0x43   :  { %991 = vmatpush.bf16.msrb.mxu2 %v2729_v14  ;;  %v3277_v39 = vld [vmem:[#allocation2 + $0x44] sm:$0xf]  ;;  %v2422_v40 = vld [vmem:[#allocation2 + $0x50] sm:$0xf0]  ;;  %v2825_v42 = vor.u32 %v3377_v34, %v2822_v35  ;;  %v2636_v14 = vld [vmem:[#allocation2 + $0x1e8] sm:$0xf] }
  0x44   :  { %1005 = vmatpush.bf16.msrb.mxu3 %v2857_v18  ;;  %v3309_v41 = vld [vmem:[#allocation2 + $0x144] sm:$0xf]  ;;  %v2550_v43 = vld [vmem:[#allocation2 + $0x150] sm:$0xf0]  ;;  %v2425_v48 = vor.u32 %v3277_v39, %v2422_v40  ;;  %v3364_v18 = vld [vmem:[#allocation2 + $0x2f4] sm:$0xf0] }
  0x45   :  { %964 = vmatpush.bf16.msrb.mxu0 %v2457_v24  ;;  %v3341_v44 = vld [vmem:[#allocation2 + $0x244] sm:$0xf]  ;;  %v2678_v45 = vld [vmem:[#allocation2 + $0x250] sm:$0xf0]  ;;  %v2553_v49 = vor.u32 %v3309_v41, %v2550_v43  ;;  %v2509_v24 = vor.u32 %v3300_v13, %v2508_v12  ;;  %v3296_v28 = vld [vmem:[#allocation2 + $0xd4] sm:$0xf0] }
  0x46   :  { %978 = vmatpush.bf16.msrb.mxu1 %v2585_v25  ;;  %v3373_v46 = vld [vmem:[#allocation2 + $0x344] sm:$0xf]  ;;  %v2806_v47 = vld [vmem:[#allocation2 + $0x350] sm:$0xf0]  ;;  %v2681_v50 = vor.u32 %v3341_v44, %v2678_v45  ;;  %v2637_v25 = vor.u32 %v3332_v16, %v2636_v14  ;;  %v2620_v29 = vld [vmem:[#allocation2 + $0x1c8] sm:$0xf] }
  0x47   :  { %992 = vmatpush.bf16.msrb.mxu2 %v2713_v26  ;;  %v3273_v51 = vld [vmem:[#allocation2 + $0x24] sm:$0xf]  ;;  %v2406_v52 = vld [vmem:[#allocation2 + $0x30] sm:$0xf0]  ;;  %v2809_v54 = vor.u32 %v3373_v46, %v2806_v47  ;;  %v2765_v26 = vor.u32 %v3364_v18, %v2764_v17  ;;  %v3328_v31 = vld [vmem:[#allocation2 + $0x1d4] sm:$0xf0] }
  0x48   :  { %1006 = vmatpush.bf16.msrb.mxu3 %v2841_v30  ;;  %v3305_v53 = vld [vmem:[#allocation2 + $0x124] sm:$0xf]  ;;  %v2534_v56 = vld [vmem:[#allocation2 + $0x130] sm:$0xf0]  ;;  %v2409_v63 = vor.u32 %v3273_v51, %v2406_v52  ;;  %v2893_v30 = vor.u32 %v3396_v22, %v2892_v21  ;;  %v2748_v32 = vld [vmem:[#allocation2 + $0x2c8] sm:$0xf] }
  0x49   :  { %965 = vmatpush.bf16.msrb.mxu0 %v2441_v36  ;;  %v3337_v57 = vld [vmem:[#allocation2 + $0x224] sm:$0xf]  ;;  %v2662_v58 = vld [vmem:[#allocation2 + $0x230] sm:$0xf0]  ;;  %v2537_v3 = vor.u32 %v3305_v53, %v2534_v56  ;;  %v3360_v33 = vld [vmem:[#allocation2 + $0x2d4] sm:$0xf0]  ;;  %v2493_v36 = vor.u32 %v3296_v28, %v2492_v27 }
  0x4a   :  { %979 = vmatpush.bf16.msrb.mxu1 %v2569_v37  ;;  %v3369_v60 = vld [vmem:[#allocation2 + $0x324] sm:$0xf]  ;;  %v2790_v61 = vld [vmem:[#allocation2 + $0x330] sm:$0xf0]  ;;  %v2665_v4 = vor.u32 %v3337_v57, %v2662_v58  ;;  %v2876_v34 = vld [vmem:[#allocation2 + $0x3c8] sm:$0xf]  ;;  %v2621_v37 = vor.u32 %v3328_v31, %v2620_v29 }
  0x4b   :  { %993 = vmatpush.bf16.msrb.mxu2 %v2697_v38  ;;  %v3269_v1 = vld [vmem:[#allocation2 + $0x4] sm:$0xf]  ;;  %v2390_v2 = vld [vmem:[#allocation2 + $0x10] sm:$0xf0]  ;;  %v2793_v8 = vor.u32 %v3369_v60, %v2790_v61  ;;  %v3392_v35 = vld [vmem:[#allocation2 + $0x3d4] sm:$0xf0]  ;;  %v2749_v38 = vor.u32 %v3360_v33, %v2748_v32 }
  0x4c   :  { %1007 = vmatpush.bf16.msrb.mxu3 %v2825_v42  ;;  %v3301_v5 = vld [vmem:[#allocation2 + $0x104] sm:$0xf]  ;;  %v2518_v6 = vld [vmem:[#allocation2 + $0x110] sm:$0xf0]  ;;  %v2393_v15 = vor.u32 %v3269_v1, %v2390_v2  ;;  %v2476_v39 = vld [vmem:[#allocation2 + $0xa8] sm:$0xf]  ;;  %v2877_v42 = vor.u32 %v3392_v35, %v2876_v34 }
  0x4d   :  { %966 = vmatpush.bf16.msrb.mxu0 %v2425_v48  ;;  %v3333_v7 = vld [vmem:[#allocation2 + $0x204] sm:$0xf]  ;;  %v2646_v9 = vld [vmem:[#allocation2 + $0x210] sm:$0xf0]  ;;  %v2521_v19 = vor.u32 %v3301_v5, %v2518_v6  ;;  %v3292_v40 = vld [vmem:[#allocation2 + $0xb4] sm:$0xf0] }
  0x4e   :  { %980 = vmatpush.bf16.msrb.mxu1 %v2553_v49  ;;  %v3365_v10 = vld [vmem:[#allocation2 + $0x304] sm:$0xf]  ;;  %v2774_v11 = vld [vmem:[#allocation2 + $0x310] sm:$0xf0]  ;;  %v2649_v20 = vor.u32 %v3333_v7, %v2646_v9  ;;  %v2604_v41 = vld [vmem:[#allocation2 + $0x1a8] sm:$0xf]  ;;  %v2477_v48 = vor.u32 %v3292_v40, %v2476_v39 }
  0x4f   :  { %994 = vmatpush.bf16.msrb.mxu2 %v2681_v50  ;;  %v2777_v23 = vor.u32 %v3365_v10, %v2774_v11  ;;  %v3324_v43 = vld [vmem:[#allocation2 + $0x1b4] sm:$0xf0]  ;;  %v2732_v44 = vld [vmem:[#allocation2 + $0x2a8] sm:$0xf] }
  0x50   :  { %1008 = vmatpush.bf16.msrb.mxu3 %v2809_v54  ;;  %v3356_v45 = vld [vmem:[#allocation2 + $0x2b4] sm:$0xf0]  ;;  %v2860_v46 = vld [vmem:[#allocation2 + $0x3a8] sm:$0xf]  ;;  %v2605_v49 = vor.u32 %v3324_v43, %v2604_v41 }
  0x51   :  { %967 = vmatpush.bf16.msrb.mxu0 %v2409_v63  ;;  %v3388_v47 = vld [vmem:[#allocation2 + $0x3b4] sm:$0xf0]  ;;  %v2733_v50 = vor.u32 %v3356_v45, %v2732_v44  ;;  %v2460_v51 = vld [vmem:[#allocation2 + $0x88] sm:$0xf] }
  0x52   :  { %981 = vmatpush.bf16.msrb.mxu1 %v2537_v3  ;;  %v3288_v52 = vld [vmem:[#allocation2 + $0x94] sm:$0xf0]  ;;  %v2588_v53 = vld [vmem:[#allocation2 + $0x188] sm:$0xf]  ;;  %v2861_v54 = vor.u32 %v3388_v47, %v2860_v46 }
  0x53   :  { %995 = vmatpush.bf16.msrb.mxu2 %v2665_v4  ;;  %v3320_v56 = vld [vmem:[#allocation2 + $0x194] sm:$0xf0]  ;;  %v2716_v57 = vld [vmem:[#allocation2 + $0x288] sm:$0xf]  ;;  %v2461_v63 = vor.u32 %v3288_v52, %v2460_v51  ;;  %v2638_v52 = vld [vmem:[#allocation2 + $0x1f8] sm:$0xf0] }
  0x54   :  { %1009 = vmatpush.bf16.msrb.mxu3 %v2793_v8  ;;  %v3352_v58 = vld [vmem:[#allocation2 + $0x294] sm:$0xf0]  ;;  %v2844_v60 = vld [vmem:[#allocation2 + $0x388] sm:$0xf]  ;;  %v2589_v1 = vor.u32 %v3320_v56, %v2588_v53  ;;  %v3362_v53 = vld [vmem:[#allocation2 + $0x2ec] sm:$0xf] }
  0x55   :  { %968 = vmatpush.bf16.msrb.mxu0 %v2393_v15  ;;  %v3384_v61 = vld [vmem:[#allocation2 + $0x394] sm:$0xf0]  ;;  %v2717_v2 = vor.u32 %v3352_v58, %v2716_v57  ;;  %v2444_v3 = vld [vmem:[#allocation2 + $0x68] sm:$0xf]  ;;  %v3394_v58 = vld [vmem:[#allocation2 + $0x3ec] sm:$0xf] }
  0x56   :  { %982 = vmatpush.bf16.msrb.mxu1 %v2521_v19  ;;  %v3284_v4 = vld [vmem:[#allocation2 + $0x74] sm:$0xf0]  ;;  %v2572_v5 = vld [vmem:[#allocation2 + $0x168] sm:$0xf]  ;;  %v2845_v6 = vor.u32 %v3384_v61, %v2844_v60  ;;  %v2894_v60 = vld [vmem:[#allocation2 + $0x3f8] sm:$0xf0] }
  0x57   :  { %996 = vmatpush.bf16.msrb.mxu2 %v2649_v20  ;;  %v3316_v7 = vld [vmem:[#allocation2 + $0x174] sm:$0xf0]  ;;  %v2700_v8 = vld [vmem:[#allocation2 + $0x268] sm:$0xf]  ;;  %v2445_v12 = vor.u32 %v3284_v4, %v2444_v3  ;;  %v3294_v3 = vld [vmem:[#allocation2 + $0xcc] sm:$0xf] }
  0x58   :  { %1010 = vmatpush.bf16.msrb.mxu3 %v2777_v23  ;;  %969 = vmatmul.bf16.vlgmr.msrb.gmra.mxu0 %v3791_v62  ;;  %v3348_v9 = vld [vmem:[#allocation2 + $0x274] sm:$0xf0]  ;;  %v2828_v10 = vld [vmem:[#allocation2 + $0x368] sm:$0xf]  ;;  %v2573_v13 = vor.u32 %v3316_v7, %v2572_v5  ;;  %v2494_v4 = vld [vmem:[#allocation2 + $0xd8] sm:$0xf0] }
  0x59   :  { %1017 = vmatpush.bf16.msra.mxu0 %v2509_v24  ;;  %983 = vmatmul.bf16.vlgmr.msrb.gmra.mxu1 %v3793_v0  ;;  %v3380_v11 = vld [vmem:[#allocation2 + $0x374] sm:$0xf0]  ;;  %v2701_v14 = vor.u32 %v3348_v9, %v2700_v8  ;;  %v2428_v15 = vld [vmem:[#allocation2 + $0x48] sm:$0xf]  ;;  %v3326_v5 = vld [vmem:[#allocation2 + $0x1cc] sm:$0xf] }
  0x5a   :  { %1031 = vmatpush.bf16.msra.mxu1 %v2637_v25  ;;  %997 = vmatmul.bf16.vlgmr.msrb.gmra.mxu2 %v3787_v55  ;;  %v3280_v16 = vld [vmem:[#allocation2 + $0x54] sm:$0xf0]  ;;  %v2556_v17 = vld [vmem:[#allocation2 + $0x148] sm:$0xf]  ;;  %v2829_v18 = vor.u32 %v3380_v11, %v2828_v10  ;;  %v2622_v7 = vld [vmem:[#allocation2 + $0x1d8] sm:$0xf0] }
  0x5b   :  { %1045 = vmatpush.bf16.msra.mxu2 %v2765_v26  ;;  %1011 = vmatmul.bf16.vlgmr.msrb.gmra.mxu3 %v3789_v59  ;;  %v3312_v19 = vld [vmem:[#allocation2 + $0x154] sm:$0xf0]  ;;  %v2684_v20 = vld [vmem:[#allocation2 + $0x248] sm:$0xf]  ;;  %v2429_v24 = vor.u32 %v3280_v16, %v2428_v15  ;;  %v3358_v8 = vld [vmem:[#allocation2 + $0x2cc] sm:$0xf] }
  0x5c   :  { %1059 = vmatpush.bf16.msra.mxu3 %v2893_v30  ;;  %v3344_v21 = vld [vmem:[#allocation2 + $0x254] sm:$0xf0]  ;;  %v2812_v22 = vld [vmem:[#allocation2 + $0x348] sm:$0xf]  ;;  %v2557_v26 = vor.u32 %v3312_v19, %v2556_v17  ;;  %v2750_v9 = vld [vmem:[#allocation2 + $0x2d8] sm:$0xf0] }
  0x5d   :  { %1018 = vmatpush.bf16.msra.mxu0 %v2493_v36  ;;  %v3376_v23 = vld [vmem:[#allocation2 + $0x354] sm:$0xf0]  ;;  %v2412_v25 = vld [vmem:[#allocation2 + $0x28] sm:$0xf]  ;;  %v2685_v27 = vor.u32 %v3344_v21, %v2684_v20  ;;  %v3390_v10 = vld [vmem:[#allocation2 + $0x3cc] sm:$0xf] }
  0x5e   :  { %1032 = vmatpush.bf16.msra.mxu1 %v2621_v37  ;;  %v3276_v28 = vld [vmem:[#allocation2 + $0x34] sm:$0xf0]  ;;  %v2540_v29 = vld [vmem:[#allocation2 + $0x128] sm:$0xf]  ;;  %v2813_v31 = vor.u32 %v3376_v23, %v2812_v22  ;;  %v2878_v11 = vld [vmem:[#allocation2 + $0x3d8] sm:$0xf0] }
  0x5f   :  { %1046 = vmatpush.bf16.msra.mxu2 %v2749_v38  ;;  %v3308_v30 = vld [vmem:[#allocation2 + $0x134] sm:$0xf0]  ;;  %v2668_v32 = vld [vmem:[#allocation2 + $0x228] sm:$0xf]  ;;  %v2413_v37 = vor.u32 %v3276_v28, %v2412_v25  ;;  %v3290_v15 = vld [vmem:[#allocation2 + $0xac] sm:$0xf] }
  0x60   :  { %1060 = vmatpush.bf16.msra.mxu3 %v2877_v42  ;;  %v3340_v33 = vld [vmem:[#allocation2 + $0x234] sm:$0xf0]  ;;  %v2796_v34 = vld [vmem:[#allocation2 + $0x328] sm:$0xf]  ;;  %v2541_v40 = vor.u32 %v3308_v30, %v2540_v29  ;;  %v2478_v16 = vld [vmem:[#allocation2 + $0xb8] sm:$0xf0] }
  0x61   :  { %1019 = vmatpush.bf16.msra.mxu0 %v2477_v48  ;;  %v3372_v35 = vld [vmem:[#allocation2 + $0x334] sm:$0xf0]  ;;  %v2396_v36 = vld [vmem:[#allocation2 + $0x8] sm:$0xf]  ;;  %v2669_v41 = vor.u32 %v3340_v33, %v2668_v32  ;;  %v3298_v48 = vld [vmem:[#allocation2 + $0xec] sm:$0xf] }
  0x62   :  { %1033 = vmatpush.bf16.msra.mxu1 %v2605_v49  ;;  %v3272_v38 = vld [vmem:[#allocation2 + $0x14] sm:$0xf0]  ;;  %v2524_v39 = vld [vmem:[#allocation2 + $0x108] sm:$0xf]  ;;  %v2797_v45 = vor.u32 %v3372_v35, %v2796_v34  ;;  %v2510_v49 = vld [vmem:[#allocation2 + $0xf8] sm:$0xf0] }
  0x63   :  { %1047 = vmatpush.bf16.msra.mxu2 %v2733_v50  ;;  %v3304_v42 = vld [vmem:[#allocation2 + $0x114] sm:$0xf0]  ;;  %v2652_v43 = vld [vmem:[#allocation2 + $0x208] sm:$0xf]  ;;  %v3330_v50 = vld [vmem:[#allocation2 + $0x1ec] sm:$0xf]  ;;  %v2397_v51 = vor.u32 %v3272_v38, %v2396_v36 }
  0x64   :  { %1061 = vmatpush.bf16.msra.mxu3 %v2861_v54  ;;  %v3336_v44 = vld [vmem:[#allocation2 + $0x214] sm:$0xf0]  ;;  %v2780_v46 = vld [vmem:[#allocation2 + $0x308] sm:$0xf]  ;;  %v2766_v54 = vld [vmem:[#allocation2 + $0x2f8] sm:$0xf0]  ;;  %v2525_v56 = vor.u32 %v3304_v42, %v2524_v39 }
  0x65   :  { %1020 = vmatpush.bf16.msra.mxu0 %v2461_v63  ;;  %v3368_v47 = vld [vmem:[#allocation2 + $0x314] sm:$0xf0]  ;;  %v2653_v57 = vor.u32 %v3336_v44, %v2652_v43  ;;  %v2513_v63 = vor.u32 %v3298_v48, %v2510_v49  ;;  %v3322_v17 = vld [vmem:[#allocation2 + $0x1ac] sm:$0xf]  ;;  %v2606_v19 = vld [vmem:[#allocation2 + $0x1b8] sm:$0xf0] }
  0x66   :  { %1034 = vmatpush.bf16.msra.mxu1 %v2589_v1  ;;  %v2781_v61 = vor.u32 %v3368_v47, %v2780_v46  ;;  %v2641_v1 = vor.u32 %v3330_v50, %v2638_v52  ;;  %v3354_v20 = vld [vmem:[#allocation2 + $0x2ac] sm:$0xf]  ;;  %v2734_v21 = vld [vmem:[#allocation2 + $0x2b8] sm:$0xf0]  ;;  %v2609_v25 = vor.u32 %v3322_v17, %v2606_v19 }
  0x67   :  { %1048 = vmatpush.bf16.msra.mxu2 %v2717_v2  ;;  %v2769_v2 = vor.u32 %v3362_v53, %v2766_v54  ;;  %v3386_v22 = vld [vmem:[#allocation2 + $0x3ac] sm:$0xf]  ;;  %v2862_v23 = vld [vmem:[#allocation2 + $0x3b8] sm:$0xf0] }
  0x68   :  { %1062 = vmatpush.bf16.msra.mxu3 %v2845_v6  ;;  %v2897_v6 = vor.u32 %v3394_v58, %v2894_v60  ;;  %v2462_v28 = vld [vmem:[#allocation2 + $0x98] sm:$0xf0]  ;;  %v3318_v29 = vld [vmem:[#allocation2 + $0x18c] sm:$0xf]  ;;  %v2865_v30 = vor.u32 %v3386_v22, %v2862_v23 }
  0x69   :  { %1021 = vmatpush.bf16.msra.mxu0 %v2445_v12  ;;  %v2497_v12 = vor.u32 %v3294_v3, %v2494_v4  ;;  %v3350_v32 = vld [vmem:[#allocation2 + $0x28c] sm:$0xf]  ;;  %v2718_v33 = vld [vmem:[#allocation2 + $0x298] sm:$0xf0] }
  0x6a   :  { %1035 = vmatpush.bf16.msra.mxu1 %v2573_v13  ;;  %v2625_v13 = vor.u32 %v3326_v5, %v2622_v7  ;;  %v3382_v34 = vld [vmem:[#allocation2 + $0x38c] sm:$0xf]  ;;  %v2846_v35 = vld [vmem:[#allocation2 + $0x398] sm:$0xf0]  ;;  %v2721_v38 = vor.u32 %v3350_v32, %v2718_v33 }
  0x6b   :  { %1049 = vmatpush.bf16.msra.mxu2 %v2701_v14  ;;  %v2753_v14 = vor.u32 %v3358_v8, %v2750_v9  ;;  %v3282_v39 = vld [vmem:[#allocation2 + $0x6c] sm:$0xf]  ;;  %v2849_v42 = vor.u32 %v3382_v34, %v2846_v35  ;;  %v2574_v43 = vld [vmem:[#allocation2 + $0x178] sm:$0xf0] }
  0x6c   :  { %1063 = vmatpush.bf16.msra.mxu3 %v2829_v18  ;;  %v2881_v18 = vor.u32 %v3390_v10, %v2878_v11  ;;  %v3346_v44 = vld [vmem:[#allocation2 + $0x26c] sm:$0xf]  ;;  %v2830_v47 = vld [vmem:[#allocation2 + $0x378] sm:$0xf0] }
  0x6d   :  { %1022 = vmatpush.bf16.msra.mxu0 %v2429_v24  ;;  %v2481_v24 = vor.u32 %v3290_v15, %v2478_v16  ;;  %v3378_v46 = vld [vmem:[#allocation2 + $0x36c] sm:$0xf]  ;;  %v2430_v52 = vld [vmem:[#allocation2 + $0x58] sm:$0xf0] }
  0x6e   :  { %1036 = vmatpush.bf16.msra.mxu1 %v2557_v26  ;;  %v2737_v26 = vor.u32 %v3354_v20, %v2734_v21  ;;  %v3310_v53 = vld [vmem:[#allocation2 + $0x14c] sm:$0xf]  ;;  %v2833_v54 = vor.u32 %v3378_v46, %v2830_v47  ;;  %v2686_v58 = vld [vmem:[#allocation2 + $0x258] sm:$0xf0] }
  0x6f   :  { %1050 = vmatpush.bf16.msra.mxu2 %v2685_v27  ;;  %v3286_v27 = vld [vmem:[#allocation2 + $0x8c] sm:$0xf]  ;;  %v2414_v4 = vld [vmem:[#allocation2 + $0x38] sm:$0xf0] }
  0x70   :  { %1064 = vmatpush.bf16.msra.mxu3 %v2813_v31  ;;  %v2590_v31 = vld [vmem:[#allocation2 + $0x198] sm:$0xf0]  ;;  %v2465_v36 = vor.u32 %v3286_v27, %v2462_v28  ;;  %v3374_v60 = vld [vmem:[#allocation2 + $0x34c] sm:$0xf] }
  0x71   :  { %1023 = vmatpush.bf16.msra.mxu0 %v2413_v37  ;;  %v2593_v37 = vor.u32 %v3318_v29, %v2590_v31  ;;  %v3274_v3 = vld [vmem:[#allocation2 + $0x2c] sm:$0xf]  ;;  %v2542_v7 = vld [vmem:[#allocation2 + $0x138] sm:$0xf0] }
  0x72   :  { %1037 = vmatpush.bf16.msra.mxu1 %v2541_v40  ;;  %v2446_v40 = vld [vmem:[#allocation2 + $0x78] sm:$0xf0]  ;;  %v3306_v5 = vld [vmem:[#allocation2 + $0x12c] sm:$0xf] }
  0x73   :  { %1051 = vmatpush.bf16.msra.mxu2 %v2669_v41  ;;  %v3314_v41 = vld [vmem:[#allocation2 + $0x16c] sm:$0xf]  ;;  %v2449_v48 = vor.u32 %v3282_v39, %v2446_v40  ;;  %v2670_v9 = vld [vmem:[#allocation2 + $0x238] sm:$0xf0] }
  0x74   :  { %1065 = vmatpush.bf16.msra.mxu3 %v2797_v45  ;;  %v2702_v45 = vld [vmem:[#allocation2 + $0x278] sm:$0xf0]  ;;  %v2577_v49 = vor.u32 %v3314_v41, %v2574_v43  ;;  %v3338_v8 = vld [vmem:[#allocation2 + $0x22c] sm:$0xf] }
  0x75   :  { %1024 = vmatpush.bf16.msra.mxu0 %v2397_v51  ;;  %v2705_v50 = vor.u32 %v3346_v44, %v2702_v45  ;;  %v3278_v51 = vld [vmem:[#allocation2 + $0x4c] sm:$0xf]  ;;  %v2798_v11 = vld [vmem:[#allocation2 + $0x338] sm:$0xf0] }
  0x76   :  { %1038 = vmatpush.bf16.msra.mxu1 %v2525_v56  ;;  %v2558_v56 = vld [vmem:[#allocation2 + $0x158] sm:$0xf0]  ;;  %v3370_v10 = vld [vmem:[#allocation2 + $0x32c] sm:$0xf] }
  0x77   :  { %1052 = vmatpush.bf16.msra.mxu2 %v2653_v57  ;;  %v3342_v57 = vld [vmem:[#allocation2 + $0x24c] sm:$0xf]  ;;  %v2398_v16 = vld [vmem:[#allocation2 + $0x18] sm:$0xf0] }
  0x78   :  { %1066 = vmatpush.bf16.msra.mxu3 %v2781_v61  ;;  %1025 = vmatmul.bf16.vlgmr.msra.gmra.mxu0 %v3791_v62  ;;  %v2814_v61 = vld [vmem:[#allocation2 + $0x358] sm:$0xf0]  ;;  %v3270_v15 = vld [vmem:[#allocation2 + $0xc] sm:$0xf] }
  0x79   :  { %1073 = vmatpush.bf16.msrb.mxu0 %v2513_v63  ;;  %1039 = vmatmul.bf16.vlgmr.msra.gmra.mxu1 %v3793_v0  ;;  %v2433_v63 = vor.u32 %v3278_v51, %v2430_v52  ;;  %v3302_v17 = vld [vmem:[#allocation2 + $0x10c] sm:$0xf]  ;;  %v2526_v19 = vld [vmem:[#allocation2 + $0x118] sm:$0xf0]  ;;  %v3667_v52 = vmov 16.0  }
  0x7a   :  { %1087 = vmatpush.bf16.msrb.mxu1 %v2641_v1  ;;  %1053 = vmatmul.bf16.vlgmr.msra.gmra.mxu2 %v3787_v55  ;;  %v2561_v1 = vor.u32 %v3310_v53, %v2558_v56  ;;  %v3334_v20 = vld [vmem:[#allocation2 + $0x20c] sm:$0xf]  ;;  %v2654_v21 = vld [vmem:[#allocation2 + $0x218] sm:$0xf0]  ;;  %3504 = vrcp.f32 %v3667_v52 }
  0x7b   :  { %1101 = vmatpush.bf16.msrb.mxu2 %v2769_v2  ;;  %1067 = vmatmul.bf16.vlgmr.msra.gmra.mxu3 %v3789_v59  ;;  %v2689_v2 = vor.u32 %v3342_v57, %v2686_v58  ;;  %v3366_v22 = vld [vmem:[#allocation2 + $0x30c] sm:$0xf]  ;;  %v2782_v23 = vld [vmem:[#allocation2 + $0x318] sm:$0xf0] }
  0x7c   :  { %1115 = vmatpush.bf16.msrb.mxu3 %v2897_v6  ;;  %v2817_v6 = vor.u32 %v3374_v60, %v2814_v61  ;;  %v2785_v27 = vor.u32 %v3366_v22, %v2782_v23 }
  0x7d   :  { %1074 = vmatpush.bf16.msrb.mxu0 %v2497_v12  ;;  %v2417_v12 = vor.u32 %v3274_v3, %v2414_v4 }
  0x7e   :  { %1088 = vmatpush.bf16.msrb.mxu1 %v2625_v13  ;;  %v2545_v13 = vor.u32 %v3306_v5, %v2542_v7 }
  0x7f   :  { %1102 = vmatpush.bf16.msrb.mxu2 %v2753_v14  ;;  %v2673_v14 = vor.u32 %v3338_v8, %v2670_v9 }
  0x80   :  { %1116 = vmatpush.bf16.msrb.mxu3 %v2881_v18  ;;  %v2801_v18 = vor.u32 %v3370_v10, %v2798_v11  ;;  %v3505_v57 = vpop.eup %3504 }
  0x81   :  { %1075 = vmatpush.bf16.msrb.mxu0 %v2481_v24  ;;  %v2401_v24 = vor.u32 %v3270_v15, %v2398_v16  ;;  %v1158_v61 = vmul.f32 16.0, %v3505_v57  ;;  %vm1162_vm0 = vweird.f32 %v3505_v57 }
  0x82   :  { %1089 = vmatpush.bf16.msrb.mxu1 %v2609_v25  ;;  %v2529_v25 = vor.u32 %v3302_v17, %v2526_v19 }
  0x83   :  { %1103 = vmatpush.bf16.msrb.mxu2 %v2737_v26  ;;  %v2657_v26 = vor.u32 %v3334_v20, %v2654_v21  ;;  %v1159_v3 = vsub.f32 1.0, %v1158_v61 }
  0x84   :  { %1117 = vmatpush.bf16.msrb.mxu3 %v2865_v30 }
  0x85   :  { %1076 = vmatpush.bf16.msrb.mxu0 %v2465_v36  ;;  %v1160_v7 = vmul.f32 %v3505_v57, %v1159_v3 }
  0x86   :  { %1090 = vmatpush.bf16.msrb.mxu1 %v2593_v37 }
  0x87   :  { %1104 = vmatpush.bf16.msrb.mxu2 %v2721_v38 }
  0x88   :  { %1118 = vmatpush.bf16.msrb.mxu3 %v2849_v42 }
  0x89   :  { %1077 = vmatpush.bf16.msrb.mxu0 %v2449_v48 }
  0x8a   :  { %1091 = vmatpush.bf16.msrb.mxu1 %v2577_v49 }
  0x8b   :  { %1105 = vmatpush.bf16.msrb.mxu2 %v2705_v50 }
  0x8c   :  { %1119 = vmatpush.bf16.msrb.mxu3 %v2833_v54 }
  0x8d   :  { %1078 = vmatpush.bf16.msrb.mxu0 %v2433_v63 }
  0x8e   :  { %1092 = vmatpush.bf16.msrb.mxu1 %v2561_v1 }
  0x8f   :  { %1106 = vmatpush.bf16.msrb.mxu2 %v2689_v2 }
  0x90   :  { %1120 = vmatpush.bf16.msrb.mxu3 %v2817_v6 }
  0x91   :  { %1079 = vmatpush.bf16.msrb.mxu0 %v2417_v12 }
  0x92   :  { %1093 = vmatpush.bf16.msrb.mxu1 %v2545_v13 }
  0x93   :  { %1107 = vmatpush.bf16.msrb.mxu2 %v2673_v14  ;;  %v1161_v14 = vadd.f32 %v3505_v57, %v1160_v7 }
  0x94   :  { %1121 = vmatpush.bf16.msrb.mxu3 %v2801_v18 }
  0x95   :  { %1080 = vmatpush.bf16.msrb.mxu0 %v2401_v24  ;;  %v3811_v20 = vsel %vm1162_vm0, %v3505_v57, %v1161_v14 }
  0x96   :  { %1094 = vmatpush.bf16.msrb.mxu1 %v2529_v25 }
  0x97   :  { %1108 = vmatpush.bf16.msrb.mxu2 %v2657_v26 }
  0x98   :  { %1122 = vmatpush.bf16.msrb.mxu3 %v2785_v27  ;;  %1081 = vmatmul.bf16.vlgmr.msrb.gmra.mxu0 %v3791_v62 }
  0x99   :  { %1095 = vmatmul.bf16.vlgmr.msrb.gmra.mxu1 %v3793_v0 }
  0x9a   :  { %1109 = vmatmul.bf16.vlgmr.msrb.gmra.mxu2 %v3787_v55 }
  0x9b   :  { %1123 = vmatmul.bf16.vlgmr.msrb.gmra.mxu3 %v3789_v59 }
  0xb6   :  { %v928_v29 = vpop.f32.mrf.mxu1 }
  0xb9   :  { %v914_v28 = vpop.f32.mrf.mxu0 }
  0xba   :  { %v929_v0 = vadd.f32 %v928_v29, %v914_v28 }
  0xbd   :  { %v942_v30 = vpop.f32.mrf.mxu2 }
  0xbe   :  { %v956_v31 = vpop.f32.mrf.mxu3  ;;  %v930_v33 = vpop.f32.mrf.mxu1  ;;  %v943_v44 = vadd.f32 %v942_v30, %v929_v0 }
  0xc0   :  { %v957_v50 = vadd.f32 %v956_v31, %v943_v44 }
  0xc1   :  { %v916_v32 = vpop.f32.mrf.mxu0 }
  0xc2   :  { %v931_v42 = vadd.f32 %v930_v33, %v916_v32 }
  0xc5   :  { %v944_v34 = vpop.f32.mrf.mxu2 }
  0xc6   :  { %v958_v35 = vpop.f32.mrf.mxu3  ;;  %v945_v45 = vadd.f32 %v944_v34, %v931_v42 }
  0xc8   :  { %v959_v51 = vadd.f32 %v958_v35, %v945_v45 }
  0xca   :  { %v1129_v56 = vadd.f32 %v959_v51, %v957_v50 }
  0xcc   :  { %v1130_v60 = vrot.slane %v1129_v56, 4 }
  0xce   :  { %v1131_v1 = vadd.f32 %v1130_v60, %v1129_v56 }
  0xd0   :  { %v1132_v6 = vrot.slane %v1131_v1, 2 }
  0xd2   :  { %v1133_v12 = vadd.f32 %v1132_v6, %v1131_v1 }
  0xd4   :  { %v1134_v19 = vrot.slane %v1133_v12, 1 }
  0xd5   :  { %v970_v36 = vpop.f32.mrf.mxu0 }
  0xd6   :  { %v984_v37 = vpop.f32.mrf.mxu1  ;;  %v1135_v26 = vadd.f32 %v1134_v19, %v1133_v12  ;;  %v3020_v12 = vld [vmem:[#allocation7 + $0xf0] sm:$0xf] }
  0xd7   :  { %v985_v39 = vadd.f32 %v984_v37, %v970_v36 }
  0xd8   :  { %v1164_v31 = vmul.f32 %v3811_v20, %v1135_v26 }
  0xda   :  { %v3823_v36 = vsub.f32 %v957_v50, %v1164_v31  ;;  %v3825_v37 = vsub.f32 %v959_v51, %v1164_v31  ;;  %v3410_v31 = vld [vmem:[#allocation7 + $0x64] sm:$0xf0] }
  0xdd   :  { %v998_v38 = vpop.f32.mrf.mxu2  ;;  %v972_v62 = vpop.f32.mrf.mxu0 }
  0xde   :  { %v1012_v40 = vpop.f32.mrf.mxu3  ;;  %v986_v41 = vpop.f32.mrf.mxu1  ;;  %v999_v55 = vadd.f32 %v998_v38, %v985_v39 }
  0xdf   :  { %v987_v43 = vadd.f32 %v986_v41, %v972_v62  ;;  %v1176_v62 = vmul.f32 %v3823_v36, %v3823_v36  ;;  %v1180_v41 = vmul.f32 %v3825_v37, %v3825_v37 }
  0xe0   :  { %v1013_v46 = vadd.f32 %v1012_v40, %v999_v55 }
  0xe1   :  { %v1184_v44 = vadd.f32 %v1180_v41, %v1176_v62  ;;  %v3442_v41 = vld [vmem:[#allocation7 + $0x164] sm:$0xf0] }
  0xe3   :  { %v1185_v50 = vrot.slane %v1184_v44, 4 }
  0xe5   :  { %v1000_v59 = vpop.f32.mrf.mxu2  ;;  %v1186_v61 = vadd.f32 %v1185_v50, %v1184_v44 }
  0xe6   :  { %v1001_v47 = vadd.f32 %v1000_v59, %v987_v43  ;;  %v1014_v48 = vpop.f32.mrf.mxu3 }
  0xe7   :  { %v1187_v6 = vrot.slane %v1186_v61, 2 }
  0xe8   :  { %v1015_v49 = vadd.f32 %v1014_v48, %v1001_v47 }
  0xea   :  { %v1136_v53 = vadd.f32 %v1015_v49, %v1013_v46 }
  0xec   :  { %v1137_v54 = vrot.slane %v1136_v53, 4 }
  0xee   :  { %v1138_v58 = vadd.f32 %v1137_v54, %v1136_v53 }
  0xf0   :  { %v1139_v63 = vrot.slane %v1138_v58, 2 }
  0xf2   :  { %v1140_v5 = vadd.f32 %v1139_v63, %v1138_v58 }
  0xf4   :  { %v1141_v9 = vrot.slane %v1140_v5, 1 }
  0xf5   :  { %v1026_v2 = vpop.f32.mrf.mxu0 }
  0xf6   :  { %v1040_v4 = vpop.f32.mrf.mxu1  ;;  %v1142_v16 = vadd.f32 %v1141_v9, %v1140_v5 }
  0xf7   :  { %v1041_v10 = vadd.f32 %v1040_v4, %v1026_v2 }
  0xf8   :  { %v1165_v22 = vmul.f32 %v3811_v20, %v1142_v16 }
  0xfa   :  { %v3814_v28 = vsub.f32 %v1013_v46, %v1165_v22  ;;  %v3816_v29 = vsub.f32 %v1015_v49, %v1165_v22  ;;  %v3148_v22 = vld [vmem:[#allocation7 + $0x1f0] sm:$0xf] }
  0xfc   :  { %v1177_v33 = vmul.f32 %v3814_v28, %v3814_v28  ;;  %v1181_v34 = vmul.f32 %v3816_v29, %v3816_v29 }
  0xfd   :  { %v1054_v8 = vpop.f32.mrf.mxu2  ;;  %v1028_v13 = vpop.f32.mrf.mxu0 }
  0xfe   :  { %v1068_v11 = vpop.f32.mrf.mxu3  ;;  %v1042_v15 = vpop.f32.mrf.mxu1  ;;  %v1055_v17 = vadd.f32 %v1054_v8, %v1041_v10  ;;  %v1191_v39 = vadd.f32 %v1181_v34, %v1177_v33  ;;  %v2956_v10 = vld [vmem:[#allocation7 + $0x70] sm:$0xf]  ;;  %v1188_v33 = vadd.f32 %v1187_v6, %v1186_v61  ;;  %v3456_v61 = vld [vmem:[#allocation7 + $0x1d4] sm:$0xf0]  ;;  %v2996_v6 = vld [vmem:[#allocation7 + $0xc0] sm:$0xf] }
  0xff   :  { %v1043_v18 = vadd.f32 %v1042_v15, %v1028_v13 }
 0x100   :  { %v1069_v23 = vadd.f32 %v1068_v11, %v1055_v17  ;;  %v1192_v43 = vrot.slane %v1191_v39, 4  ;;  %v3412_v11 = vld [vmem:[#allocation7 + $0x74] sm:$0xf0]  ;;  %v1189_v50 = vrot.slane %v1188_v33, 1 }
 0x101   :  { %v2957_v16 = vor.u32 %v3412_v11, %v2956_v10  ;;  %v3428_v17 = vld [vmem:[#allocation7 + $0xf4] sm:$0xf0]  ;;  %v3422_v11 = vld [vmem:[#allocation7 + $0xc4] sm:$0xf0] }
 0x102   :  { %v1193_v46 = vadd.f32 %v1192_v43, %v1191_v39  ;;  %v3021_v19 = vor.u32 %v3428_v17, %v3020_v12  ;;  %v3426_v39 = vld [vmem:[#allocation7 + $0xe4] sm:$0xf0]  ;;  %v3060_v12 = vld [vmem:[#allocation7 + $0x140] sm:$0xf] }
 0x103   :  { %1727 = vmatpush.bf16.msra.mxu0 %v2957_v16  ;;  %v3438_v16 = vld [vmem:[#allocation7 + $0x144] sm:$0xf0]  ;;  %v3124_v17 = vld [vmem:[#allocation7 + $0x1c0] sm:$0xf] }
 0x104   :  { %v1194_v54 = vrot.slane %v1193_v46, 2  ;;  %1741 = vmatpush.bf16.msra.mxu1 %v3021_v19 }
 0x105   :  { %v1056_v21 = vpop.f32.mrf.mxu2 }
 0x106   :  { %v1057_v24 = vadd.f32 %v1056_v21, %v1043_v18  ;;  %v1070_v25 = vpop.f32.mrf.mxu3  ;;  %v1195_v1 = vadd.f32 %v1194_v54, %v1193_v46  ;;  %v3084_v18 = vld [vmem:[#allocation7 + $0x170] sm:$0xf]  ;;  %v3444_v21 = vld [vmem:[#allocation7 + $0x174] sm:$0xf0] }
 0x107   :  { %v3085_v26 = vor.u32 %v3444_v21, %v3084_v18  ;;  %v3408_v46 = vld [vmem:[#allocation7 + $0x54] sm:$0xf0]  ;;  %v3454_v18 = vld [vmem:[#allocation7 + $0x1c4] sm:$0xf0] }
 0x108   :  { %v1071_v27 = vadd.f32 %v1070_v25, %v1057_v24  ;;  %v1196_v13 = vrot.slane %v1195_v1, 1  ;;  %v3424_v54 = vld [vmem:[#allocation7 + $0xd4] sm:$0xf0] }
 0x109   :  { %1755 = vmatpush.bf16.msra.mxu2 %v3085_v26  ;;  %v2988_v26 = vld [vmem:[#allocation7 + $0xb0] sm:$0xf] }
 0x10a   :  { %v1143_v30 = vadd.f32 %v1071_v27, %v1069_v23  ;;  %v1197_v34 = vadd.f32 %v1196_v13, %v1195_v1  ;;  %v2997_v13 = vor.u32 %v3422_v11, %v2996_v6  ;;  %v3100_v11 = vld [vmem:[#allocation7 + $0x190] sm:$0xf] }
 0x10c   :  { %v1144_v32 = vrot.slane %v1143_v30, 4 }
 0x10e   :  { %v1145_v35 = vadd.f32 %v1144_v32, %v1143_v30  ;;  %v2948_v30 = vld [vmem:[#allocation7 + $0x60] sm:$0xf] }
 0x10f   :  { %v3012_v32 = vld [vmem:[#allocation7 + $0xe0] sm:$0xf] }
 0x110   :  { %v1146_v38 = vrot.slane %v1145_v35, 2  ;;  %v3013_v62 = vor.u32 %v3426_v39, %v3012_v32  ;;  %v3420_v32 = vld [vmem:[#allocation7 + $0xb4] sm:$0xf0] }
 0x112   :  { %v1147_v40 = vadd.f32 %v1146_v38, %v1145_v35  ;;  %v2949_v38 = vor.u32 %v3410_v31, %v2948_v30  ;;  %1742 = vmatpush.bf16.msra.mxu1 %v3013_v62  ;;  %v3452_v62 = vld [vmem:[#allocation7 + $0x1b4] sm:$0xf0] }
 0x114   :  { %v1148_v0 = vrot.slane %v1147_v40, 1  ;;  %1728 = vmatpush.bf16.msra.mxu0 %v2949_v38  ;;  %v2989_v38 = vor.u32 %v3420_v32, %v2988_v26  ;;  %v3430_v26 = vld [vmem:[#allocation7 + $0x104] sm:$0xf0] }
 0x115   :  { %v1082_v42 = vpop.f32.mrf.mxu0 }
 0x116   :  { %v1096_v55 = vpop.f32.mrf.mxu1  ;;  %v1149_v59 = vadd.f32 %v1148_v0, %v1147_v40  ;;  %v3076_v40 = vld [vmem:[#allocation7 + $0x160] sm:$0xf] }
 0x117   :  { %v1097_v57 = vadd.f32 %v1096_v55, %v1082_v42  ;;  %v3140_v0 = vld [vmem:[#allocation7 + $0x1e0] sm:$0xf]  ;;  %v3458_v42 = vld [vmem:[#allocation7 + $0x1e4] sm:$0xf0] }
 0x118   :  { %v1166_v45 = vmul.f32 %v3811_v20, %v1149_v59  ;;  %v3077_v59 = vor.u32 %v3442_v41, %v3076_v40  ;;  %v3141_v44 = vor.u32 %v3458_v42, %v3140_v0  ;;  %v3116_v40 = vld [vmem:[#allocation7 + $0x1b0] sm:$0xf] }
 0x11a   :  { %v3832_v47 = vsub.f32 %v1069_v23, %v1166_v45  ;;  %v3834_v48 = vsub.f32 %v1071_v27, %v1166_v45  ;;  %v3460_v23 = vld [vmem:[#allocation7 + $0x1f4] sm:$0xf0]  ;;  %v2940_v45 = vld [vmem:[#allocation7 + $0x50] sm:$0xf]  ;;  %1756 = vmatpush.bf16.msra.mxu2 %v3077_v59  ;;  %v3402_v59 = vld [vmem:[#allocation7 + $0x24] sm:$0xf0] }
 0x11b   :  { %v3149_v27 = vor.u32 %v3460_v23, %v3148_v22  ;;  %v3061_v22 = vor.u32 %v3438_v16, %v3060_v12  ;;  %v3125_v23 = vor.u32 %v3454_v18, %v3124_v17  ;;  %v3448_v12 = vld [vmem:[#allocation7 + $0x194] sm:$0xf0]  ;;  %v2900_v17 = vld [vmem:[#allocation7] sm:$0xf]  ;;  %v3398_v18 = vld [vmem:[#allocation7 + $0x4] sm:$0xf0] }
 0x11c   :  { %v1178_v51 = vmul.f32 %v3832_v47, %v3832_v47  ;;  %v1182_v52 = vmul.f32 %v3834_v48, %v3834_v48  ;;  %v3101_v16 = vor.u32 %v3448_v12, %v3100_v11  ;;  %v3423_v12 = vld [vmem:[#allocation7 + $0xd4] sm:$0xf] }
 0x11d   :  { %v1110_v49 = vpop.f32.mrf.mxu2  ;;  %v1084_v58 = vpop.f32.mrf.mxu0  ;;  %1769 = vmatpush.bf16.msra.mxu3 %v3149_v27 }
 0x11e   :  { %v1124_v53 = vpop.f32.mrf.mxu3  ;;  %v1198_v56 = vadd.f32 %v1182_v52, %v1178_v51  ;;  %v1098_v60 = vpop.f32.mrf.mxu1  ;;  %v1111_v3 = vadd.f32 %v1110_v49, %v1097_v57  ;;  %v3004_v49 = vld [vmem:[#allocation7 + $0xd0] sm:$0xf]  ;;  %v1213_v51 = vmul.f32 %v1197_v34, %v3811_v20  ;;  %v3436_v34 = vld [vmem:[#allocation7 + $0x134] sm:$0xf0] }
 0x11f   :  { %v1099_v4 = vadd.f32 %v1098_v60, %v1084_v58  ;;  %v3005_v57 = vor.u32 %v3424_v54, %v3004_v49  ;;  %v3440_v58 = vld [vmem:[#allocation7 + $0x154] sm:$0xf0]  ;;  %v3132_v60 = vld [vmem:[#allocation7 + $0x1d0] sm:$0xf]  ;;  %v3450_v54 = vld [vmem:[#allocation7 + $0x1a4] sm:$0xf0] }
 0x120   :  { %v1199_v63 = vrot.slane %v1198_v56, 4  ;;  %v3840_v14 = vadd.f32 %v1124_v53, %v1111_v3  ;;  %v2941_v53 = vor.u32 %v3408_v46, %v2940_v45  ;;  %v3133_v3 = vor.u32 %v3456_v61, %v3132_v60  ;;  %v2908_v61 = vld [vmem:[#allocation7 + $0x10] sm:$0xf] }
 0x121   :  { %1770 = vmatpush.bf16.msra.mxu3 %v3141_v44  ;;  %1743 = vmatpush.bf16.msra.mxu1 %v3005_v57  ;;  %v2980_v44 = vld [vmem:[#allocation7 + $0xa0] sm:$0xf] }
 0x122   :  { %v1200_v2 = vadd.f32 %v1199_v63, %v1198_v56  ;;  %v3068_v56 = vld [vmem:[#allocation7 + $0x150] sm:$0xf]  ;;  %1729 = vmatpush.bf16.msra.mxu0 %v2941_v53  ;;  %v3108_v53 = vld [vmem:[#allocation7 + $0x1a0] sm:$0xf] }
 0x123   :  { %v3109_v60 = vor.u32 %v3450_v54, %v3108_v53  ;;  %v3425_v54 = vld [vmem:[#allocation7 + $0xe4] sm:$0xf] }
 0x124   :  { %v1201_v7 = vrot.slane %v1200_v2, 2 }
 0x125   :  { %v1112_v5 = vpop.f32.mrf.mxu2  ;;  %1771 = vmatpush.bf16.msra.mxu3 %v3133_v3  ;;  %1744 = vmatpush.bf16.msra.mxu1 %v2997_v13  ;;  %v2972_v3 = vld [vmem:[#allocation7 + $0x90] sm:$0xf] }
 0x126   :  { %v1113_v8 = vadd.f32 %v1112_v5, %v1099_v4  ;;  %v1126_v9 = vpop.f32.mrf.mxu3  ;;  %v1202_v24 = vadd.f32 %v1201_v7, %v1200_v2  ;;  %v3069_v2 = vor.u32 %v3440_v58, %v3068_v56  ;;  %v2932_v4 = vld [vmem:[#allocation7 + $0x40] sm:$0xf]  ;;  %v3406_v5 = vld [vmem:[#allocation7 + $0x44] sm:$0xf0]  ;;  %v1190_v7 = vadd.f32 %v1189_v50, %v1188_v33  ;;  %v3052_v33 = vld [vmem:[#allocation7 + $0x130] sm:$0xf] }
 0x127   :  { %v2933_v10 = vor.u32 %v3406_v5, %v2932_v4  ;;  %v3053_v39 = vor.u32 %v3436_v34, %v3052_v33  ;;  %v3416_v4 = vld [vmem:[#allocation7 + $0x94] sm:$0xf0]  ;;  %v3411_v33 = vld [vmem:[#allocation7 + $0x74] sm:$0xf]  ;;  %v2958_v34 = vld [vmem:[#allocation7 + $0x78] sm:$0xf0] }
 0x128   :  { %v3842_v15 = vadd.f32 %v1126_v9, %v1113_v8  ;;  %v1203_v55 = vrot.slane %v1202_v24, 1  ;;  %v1217_v8 = vmax.f32 %v1213_v51, 0.0  ;;  %1757 = vmatpush.bf16.msra.mxu2 %v3069_v2  ;;  %v1212_v27 = vmul.f32 %v1190_v7, %v3811_v20  ;;  %v3044_v51 = vld [vmem:[#allocation7 + $0x120] sm:$0xf]  ;;  %v3036_v7 = vld [vmem:[#allocation7 + $0x110] sm:$0xf] }
 0x129   :  { %1730 = vmatpush.bf16.msra.mxu0 %v2933_v10  ;;  %1772 = vmatpush.bf16.msra.mxu3 %v3125_v23  ;;  %v2973_v6 = vor.u32 %v3416_v4, %v2972_v3  ;;  %v3414_v23 = vld [vmem:[#allocation7 + $0x84] sm:$0xf0]  ;;  %v3457_v3 = vld [vmem:[#allocation7 + $0x1e4] sm:$0xf]  ;;  %v3142_v4 = vld [vmem:[#allocation7 + $0x1e8] sm:$0xf0] }
 0x12a   :  { %v1150_v25 = vadd.f32 %v3842_v15, %v3840_v14  ;;  %v1204_v63 = vadd.f32 %v1203_v55, %v1202_v24  ;;  %v2924_v24 = vld [vmem:[#allocation7 + $0x30] sm:$0xf]  ;;  %v3117_v55 = vor.u32 %v3452_v62, %v3116_v40  ;;  %1745 = vmatpush.bf16.msra.mxu1 %v2989_v38  ;;  %v1216_v45 = vmax.f32 %v1212_v27, 0.0  ;;  %v3092_v27 = vld [vmem:[#allocation7 + $0x180] sm:$0xf] }
 0x12b   :  { %v2961_v40 = vor.u32 %v3411_v33, %v2958_v34  ;;  %v3427_v62 = vld [vmem:[#allocation7 + $0xf4] sm:$0xf]  ;;  %v2934_v33 = vld [vmem:[#allocation7 + $0x48] sm:$0xf0] }
 0x12c   :  { %v1151_v35 = vrot.slane %v1150_v25, 4  ;;  %v1214_v19 = vmul.f32 %v1204_v63, %v3811_v20  ;;  %1758 = vmatpush.bf16.msra.mxu2 %v3061_v22  ;;  %v3400_v63 = vld [vmem:[#allocation7 + $0x14] sm:$0xf0]  ;;  %v3865_v5 = vadd.f32 1e-05, %v1216_v45  ;;  %v2901_v22 = vor.u32 %v3398_v18, %v2900_v17 }
 0x12d   :  { %1773 = vmatpush.bf16.msra.mxu3 %v3117_v55  ;;  %v2909_v2 = vor.u32 %v3400_v63, %v2908_v61  ;;  %v3443_v55 = vld [vmem:[#allocation7 + $0x174] sm:$0xf]  ;;  %v3086_v45 = vld [vmem:[#allocation7 + $0x178] sm:$0xf0] }
 0x12e   :  { %v1152_v43 = vadd.f32 %v1151_v35, %v1150_v25  ;;  %v3404_v25 = vld [vmem:[#allocation7 + $0x34] sm:$0xf0]  ;;  %v3850_v35 = vadd.f32 1e-05, %v1217_v8  ;;  %v1218_v41 = vmax.f32 %v1214_v19, 0.0  ;;  %vm1231_vm12 = vweird.f32 %v3865_v5 }
 0x12f   :  { %v2925_v31 = vor.u32 %v3404_v25, %v2924_v24  ;;  %v3432_v8 = vld [vmem:[#allocation7 + $0x114] sm:$0xf0]  ;;  %v2964_v19 = vld [vmem:[#allocation7 + $0x80] sm:$0xf] }
 0x130   :  { %v1153_v52 = vrot.slane %v1152_v43, 2  ;;  %1759 = vmatpush.bf16.msra.mxu2 %v3053_v39  ;;  %3506 = vrsqrt.f32 %v3850_v35  ;;  %v3863_v56 = vadd.f32 1e-05, %v1218_v41  ;;  %v3037_v10 = vor.u32 %v3432_v8, %v3036_v7  ;;  %v3028_v24 = vld [vmem:[#allocation7 + $0x100] sm:$0xf] }
 0x131   :  { %1731 = vmatpush.bf16.msra.mxu0 %v2925_v31  ;;  %1774 = vmatpush.bf16.msra.mxu3 %v3109_v60  ;;  %v2965_v25 = vor.u32 %v3414_v23, %v2964_v19  ;;  %v3029_v32 = vor.u32 %v3430_v26, %v3028_v24  ;;  %v3022_v41 = vld [vmem:[#allocation7 + $0xf8] sm:$0xf0]  ;;  %v3145_v8 = vor.u32 %v3457_v3, %v3142_v4  ;;  %v3455_v26 = vld [vmem:[#allocation7 + $0x1d4] sm:$0xf]  ;;  %vm1241_vm2 = vweird.f32 %v3850_v35 }
 0x132   :  { %v1154_v1 = vadd.f32 %v1153_v52, %v1152_v43  ;;  %v2916_v43 = vld [vmem:[#allocation7 + $0x20] sm:$0xf]  ;;  %v3434_v52 = vld [vmem:[#allocation7 + $0x124] sm:$0xf0]  ;;  %3508 = vrsqrt.f32 %v3863_v56  ;;  %vm1251_vm5 = vweird.f32 %v3863_v56 }
 0x133   :  { %v2917_v50 = vor.u32 %v3402_v59, %v2916_v43  ;;  %v3045_v58 = vor.u32 %v3434_v52, %v3044_v51  ;;  %3510 = vrsqrt.f32 %v3865_v5  ;;  %v2950_v51 = vld [vmem:[#allocation7 + $0x68] sm:$0xf0] }
 0x134   :  { %v1155_v9 = vrot.slane %v1154_v1, 1 }
 0x135   :  { %1732 = vmatpush.bf16.msra.mxu0 %v2917_v50  ;;  %1760 = vmatpush.bf16.msra.mxu2 %v3045_v58  ;;  %v3150_v50 = vld [vmem:[#allocation7 + $0x1f8] sm:$0xf0]  ;;  %v3441_v58 = vld [vmem:[#allocation7 + $0x164] sm:$0xf] }
 0x136   :  { %v1156_v21 = vadd.f32 %v1155_v9, %v1154_v1  ;;  %v3868_v13 = vpop.eup %3506  ;;  %1775 = vmatpush.bf16.msra.mxu3 %v3101_v16  ;;  %v3006_v16 = vld [vmem:[#allocation7 + $0xd8] sm:$0xf0] }
 0x137   :  { %v1236_v38 = vmul.f32 %v3868_v13, %v3850_v35  ;;  %v3009_v19 = vor.u32 %v3423_v12, %v3006_v16  ;;  %vm1242_vm1 = vweird.f32 %v3868_v13  ;;  %v3451_v35 = vld [vmem:[#allocation7 + $0x1b4] sm:$0xf]  ;;  %v3401_v12 = vld [vmem:[#allocation7 + $0x24] sm:$0xf]  ;;  %v2918_v16 = vld [vmem:[#allocation7 + $0x28] sm:$0xf0] }
 0x138   :  { %v1167_v30 = vmul.f32 %v3811_v20, %v1156_v21  ;;  %v3873_v43 = vpop.eup %3508  ;;  %vm3900_vm3 = vmor %vm1241_vm2, %vm1242_vm1 }
 0x139   :  { %1733 = vmatpush.bf16.msra.mxu0 %v2909_v2  ;;  %1761 = vmatpush.bf16.msra.mxu2 %v3037_v10  ;;  %v3875_v60 = vpop.eup %3510  ;;  %v1237_v61 = vmul.f32 %v3868_v13, %v1236_v38  ;;  %v1246_v63 = vmul.f32 %v3873_v43, %v3863_v56  ;;  %v3078_v2 = vld [vmem:[#allocation7 + $0x168] sm:$0xf0]  ;;  %v2942_v10 = vld [vmem:[#allocation7 + $0x58] sm:$0xf0]  ;;  %v3421_v38 = vld [vmem:[#allocation7 + $0xc4] sm:$0xf]  ;;  %vm1252_vm4 = vweird.f32 %v3873_v43 }
 0x13a   :  { %v3853_v0 = vsub.f32 %v3840_v14, %v1167_v30  ;;  %v3856_v42 = vsub.f32 %v3842_v15, %v1167_v30  ;;  %v3418_v14 = vld [vmem:[#allocation7 + $0xa4] sm:$0xf0]  ;;  %v3081_v7 = vor.u32 %v3441_v58, %v3078_v2  ;;  %v1226_v17 = vmul.f32 %v3875_v60, %v3865_v5  ;;  %v3054_v2 = vld [vmem:[#allocation7 + $0x138] sm:$0xf0]  ;;  %vm3914_vm7 = vmor %vm1251_vm5, %vm1252_vm4 }
 0x13b   :  { %v2981_v15 = vor.u32 %v3418_v14, %v2980_v44  ;;  %v3446_v30 = vld [vmem:[#allocation7 + $0x184] sm:$0xf0]  ;;  %v3025_v44 = vor.u32 %v3427_v62, %v3022_v41  ;;  %v3409_v14 = vld [vmem:[#allocation7 + $0x64] sm:$0xf]  ;;  %v1238_v23 = vmul.f32 0.5, %v1237_v61  ;;  %v1247_v24 = vmul.f32 %v3873_v43, %v1246_v63 }
 0x13c   :  { %v1179_v46 = vmul.f32 %v3853_v0, %v3853_v0  ;;  %v1183_v49 = vmul.f32 %v3856_v42, %v3856_v42  ;;  %v3093_v39 = vor.u32 %v3446_v30, %v3092_v27  ;;  %v2953_v53 = vor.u32 %v3409_v14, %v2950_v51  ;;  %v3134_v27 = vld [vmem:[#allocation7 + $0x1d8] sm:$0xf0]  ;;  %v3449_v56 = vld [vmem:[#allocation7 + $0x1a4] sm:$0xf] }
 0x13d   :  { %1746 = vmatpush.bf16.msra.mxu1 %v2981_v15  ;;  %1734 = vmatpush.bf16.msra.mxu0 %v2901_v22  ;;  %v3070_v22 = vld [vmem:[#allocation7 + $0x158] sm:$0xf0]  ;;  %v1227_v62 = vmul.f32 %v3875_v60, %v1226_v17  ;;  %v3417_v17 = vld [vmem:[#allocation7 + $0xa4] sm:$0xf]  ;;  %vm1232_vm11 = vweird.f32 %v3875_v60 }
 0x13e   :  { %v1205_v57 = vadd.f32 %v1183_v49, %v1179_v46  ;;  %1762 = vmatpush.bf16.msra.mxu2 %v3029_v32  ;;  %v3459_v46 = vld [vmem:[#allocation7 + $0x1f4] sm:$0xf]  ;;  %1776 = vmatpush.bf16.msra.mxu3 %v3093_v39  ;;  %v3089_v49 = vor.u32 %v3443_v55, %v3086_v45  ;;  %v3405_v32 = vld [vmem:[#allocation7 + $0x44] sm:$0xf]  ;;  %v2998_v39 = vld [vmem:[#allocation7 + $0xc8] sm:$0xf0] }
 0x13f   :  { %v3153_v52 = vor.u32 %v3459_v46, %v3150_v50  ;;  %v2937_v34 = vor.u32 %v3405_v32, %v2934_v33  ;;  %v3001_v41 = vor.u32 %v3421_v38, %v2998_v39  ;;  %v3062_v55 = vld [vmem:[#allocation7 + $0x148] sm:$0xf0]  ;;  %v1239_v45 = vsub.f32 1.5, %v1238_v23  ;;  %v2990_v63 = vld [vmem:[#allocation7 + $0xb8] sm:$0xf0]  ;;  %vm1233_vm14 = vmor %vm1231_vm12, %vm1232_vm11 }
 0x140   :  { %v1206_v1 = vrot.slane %v1205_v57, 4  ;;  %v1248_v46 = vmul.f32 0.5, %v1247_v24  ;;  %v3888_v14 = vmul.f32 0.5, %v1227_v62  ;;  %v3046_v23 = vld [vmem:[#allocation7 + $0x128] sm:$0xf0] }
 0x141   :  { %1747 = vmatpush.bf16.msra.mxu1 %v2973_v6  ;;  %1783 = vmatpush.bf16.msrb.mxu0 %v2961_v40  ;;  %v3437_v40 = vld [vmem:[#allocation7 + $0x144] sm:$0xf]  ;;  %v1240_v51 = vmul.f32 %v3868_v13, %v1239_v45  ;;  %v3399_v32 = vld [vmem:[#allocation7 + $0x14] sm:$0xf]  ;;  %v2910_v33 = vld [vmem:[#allocation7 + $0x18] sm:$0xf0] }
 0x142   :  { %v1207_v9 = vadd.f32 %v1206_v1, %v1205_v57  ;;  %v3014_v57 = vld [vmem:[#allocation7 + $0xe8] sm:$0xf0]  ;;  %1811 = vmatpush.bf16.msrb.mxu2 %v3089_v49  ;;  %1825 = vmatpush.bf16.msrb.mxu3 %v3153_v52  ;;  %v3065_v49 = vor.u32 %v3437_v40, %v3062_v55  ;;  %v1229_v3 = vsub.f32 1.5, %v3888_v14  ;;  %v2913_v62 = vor.u32 %v3399_v32, %v2910_v33  ;;  %v3431_v55 = vld [vmem:[#allocation7 + $0x114] sm:$0xf] }
 0x143   :  { %v3017_v1 = vor.u32 %v3425_v54, %v3014_v57  ;;  %v2926_v54 = vld [vmem:[#allocation7 + $0x38] sm:$0xf0]  ;;  %v3419_v57 = vld [vmem:[#allocation7 + $0xb4] sm:$0xf] }
 0x144   :  { %v1208_v21 = vrot.slane %v1207_v9, 2  ;;  %v3447_v45 = vld [vmem:[#allocation7 + $0x194] sm:$0xf] }
 0x145   :  { %1748 = vmatpush.bf16.msra.mxu1 %v2965_v25  ;;  %1784 = vmatpush.bf16.msrb.mxu0 %v2953_v53  ;;  %v3403_v53 = vld [vmem:[#allocation7 + $0x34] sm:$0xf] }
 0x146   :  { %v1209_v31 = vadd.f32 %v1208_v21, %v1207_v9  ;;  %v3407_v9 = vld [vmem:[#allocation7 + $0x54] sm:$0xf]  ;;  %1812 = vmatpush.bf16.msrb.mxu2 %v3081_v7  ;;  %1826 = vmatpush.bf16.msrb.mxu3 %v3145_v8  ;;  %v2929_v61 = vor.u32 %v3403_v53, %v2926_v54  ;;  %v3118_v8 = vld [vmem:[#allocation7 + $0x1b8] sm:$0xf0]  ;;  %v2902_v53 = vld [vmem:[#allocation7 + $0x8] sm:$0xf0] }
 0x147   :  { %v2945_v11 = vor.u32 %v3407_v9, %v2942_v10  ;;  %v3439_v21 = vld [vmem:[#allocation7 + $0x154] sm:$0xf]  ;;  %v1244_v9 = vsel %vm3900_vm3, %v3868_v13, %v1240_v51  ;;  %v3413_v54 = vld [vmem:[#allocation7 + $0x84] sm:$0xf] }
 0x148   :  { %v1210_v59 = vrot.slane %v1209_v31, 1  ;;  %v3073_v25 = vor.u32 %v3439_v21, %v3070_v22  ;;  %v2982_v21 = vld [vmem:[#allocation7 + $0xa8] sm:$0xf0]  ;;  %v3433_v22 = vld [vmem:[#allocation7 + $0x124] sm:$0xf]  ;;  %v1269_v40 = vrot.slane %v1244_v9, 7 }
 0x149   :  { %1797 = vmatpush.bf16.msrb.mxu1 %v3025_v44  ;;  %1785 = vmatpush.bf16.msrb.mxu0 %v2945_v11  ;;  %v3126_v44 = vld [vmem:[#allocation7 + $0x1c8] sm:$0xf0]  ;;  %v3121_v11 = vor.u32 %v3451_v35, %v3118_v8 }
 0x14a   :  { %v1211_v15 = vadd.f32 %v1210_v59, %v1209_v31  ;;  %v3137_v31 = vor.u32 %v3455_v26, %v3134_v27  ;;  %v3453_v59 = vld [vmem:[#allocation7 + $0x1c4] sm:$0xf]  ;;  %1813 = vmatpush.bf16.msrb.mxu2 %v3073_v25  ;;  %v2985_v25 = vor.u32 %v3417_v17, %v2982_v21  ;;  %v3049_v26 = vor.u32 %v3433_v22, %v3046_v23  ;;  %v3110_v27 = vld [vmem:[#allocation7 + $0x1a8] sm:$0xf0] }
 0x14b   :  { %v3129_v50 = vor.u32 %v3453_v59, %v3126_v44  ;;  %v3038_v44 = vld [vmem:[#allocation7 + $0x118] sm:$0xf0] }
 0x14c   :  { %v1215_v6 = vmul.f32 %v1211_v15, %v3811_v20  ;;  %1827 = vmatpush.bf16.msrb.mxu3 %v3137_v31  ;;  %v1249_v15 = vsub.f32 1.5, %v1248_v46  ;;  %v3113_v31 = vor.u32 %v3449_v56, %v3110_v27  ;;  %v3102_v46 = vld [vmem:[#allocation7 + $0x198] sm:$0xf0]  ;;  %v3041_v14 = vor.u32 %v3431_v55, %v3038_v44 }
 0x14d   :  { %1798 = vmatpush.bf16.msrb.mxu1 %v3017_v1  ;;  %1786 = vmatpush.bf16.msrb.mxu0 %v2937_v34  ;;  %v3435_v1 = vld [vmem:[#allocation7 + $0x134] sm:$0xf]  ;;  %v3105_v51 = vor.u32 %v3447_v45, %v3102_v46 }
 0x14e   :  { %v1219_v18 = vmax.f32 %v1215_v6, 0.0  ;;  %1814 = vmatpush.bf16.msrb.mxu2 %v3065_v49  ;;  %v2993_v6 = vor.u32 %v3419_v57, %v2990_v63  ;;  %v3057_v7 = vor.u32 %v3435_v1, %v3054_v2  ;;  %v3415_v34 = vld [vmem:[#allocation7 + $0x94] sm:$0xf]  ;;  %v1230_v49 = vmul.f32 %v3875_v60, %v1229_v3  ;;  %v2966_v57 = vld [vmem:[#allocation7 + $0x88] sm:$0xf0] }
 0x14f   :  { %v3445_v2 = vld [vmem:[#allocation7 + $0x184] sm:$0xf]  ;;  %v3094_v3 = vld [vmem:[#allocation7 + $0x188] sm:$0xf0]  ;;  %v2969_v5 = vor.u32 %v3413_v54, %v2966_v57 }
 0x150   :  { %v3884_v30 = vadd.f32 1e-05, %v1219_v18  ;;  %1828 = vmatpush.bf16.msrb.mxu3 %v3129_v50  ;;  %v1250_v18 = vmul.f32 %v3873_v43, %v1249_v15  ;;  %v3397_v15 = vld [vmem:[#allocation7 + $0x4] sm:$0xf]  ;;  %v1234_v35 = vsel %vm1233_vm14, %v3875_v60, %v1230_v49 }
 0x151   :  { %1799 = vmatpush.bf16.msrb.mxu1 %v3009_v19  ;;  %1787 = vmatpush.bf16.msrb.mxu0 %v2929_v61  ;;  %v2921_v19 = vor.u32 %v3401_v12, %v2918_v16  ;;  %v2905_v1 = vor.u32 %v3397_v15, %v2902_v53  ;;  %v1273_v8 = vsel %vm1272_vm8, %v1234_v35, %v1269_v40 }
 0x152   :  { %3512 = vrsqrt.f32 %v3884_v30  ;;  %1815 = vmatpush.bf16.msrb.mxu2 %v3057_v7  ;;  %vm1261_vm9 = vweird.f32 %v3884_v30  ;;  %v1220_v7 = vld [vmem:[#allocation4] sm:$0xf] }
 0x154   :  { %1829 = vmatpush.bf16.msrb.mxu3 %v3121_v11 }
 0x155   :  { %1800 = vmatpush.bf16.msrb.mxu1 %v3001_v41  ;;  %1788 = vmatpush.bf16.msrb.mxu0 %v2921_v19  ;;  %v2974_v41 = vld [vmem:[#allocation7 + $0x98] sm:$0xf0] }
 0x156   :  { %1816 = vmatpush.bf16.msrb.mxu2 %v3049_v26  ;;  %v2977_v59 = vor.u32 %v3415_v34, %v2974_v41 }
 0x158   :  { %v3892_v52 = vpop.eup %3512  ;;  %1830 = vmatpush.bf16.msrb.mxu3 %v3113_v31 }
 0x159   :  { %v1256_v58 = vmul.f32 %v3892_v52, %v3884_v30  ;;  %vm1262_vm6 = vweird.f32 %v3892_v52  ;;  %1801 = vmatpush.bf16.msrb.mxu1 %v2993_v6  ;;  %v1254_v30 = vsel %vm3914_vm7, %v3873_v43, %v1250_v18  ;;  %v3429_v43 = vld [vmem:[#allocation7 + $0x104] sm:$0xf]  ;;  %1789 = vmatpush.bf16.msrb.mxu0 %v2913_v62 }
 0x15a   :  { %vm3921_vm10 = vmor %vm1261_vm9, %vm1262_vm6  ;;  %v1270_v63 = vrot.slane %v1254_v30, 6  ;;  %1817 = vmatpush.bf16.msrb.mxu2 %v3041_v14 }
 0x15b   :  { %v1257_v10 = vmul.f32 %v3892_v52, %v1256_v58  ;;  %v3030_v58 = vld [vmem:[#allocation7 + $0x108] sm:$0xf0] }
 0x15c   :  { %v3033_v6 = vor.u32 %v3429_v43, %v3030_v58  ;;  %1831 = vmatpush.bf16.msrb.mxu3 %v3105_v51 }
 0x15d   :  { %v1258_v24 = vmul.f32 0.5, %v1257_v10  ;;  %1802 = vmatpush.bf16.msrb.mxu1 %v2985_v25  ;;  %v1297_v10 = vld [vmem:[#allocation6] sm:$0xf]  ;;  %1790 = vmatpush.bf16.msrb.mxu0 %v2905_v1 }
 0x15e   :  { %1818 = vmatpush.bf16.msrb.mxu2 %v3033_v6  ;;  %v1302_v16 = vperm.slane %v1297_v10, 3  ;;  %v1299_v17 = vperm.slane %v1297_v10, 0  ;;  %v1300_v60 = vperm.slane %v1297_v10, 1  ;;  %v1301_v23 = vperm.slane %v1297_v10, 2 }
 0x15f   :  { %v1259_v38 = vsub.f32 1.5, %v1258_v24 }
 0x161   :  { %v1260_v50 = vmul.f32 %v3892_v52, %v1259_v38  ;;  %1803 = vmatpush.bf16.msrb.mxu1 %v2977_v59 }
 0x163   :  { %v1264_v61 = vsel %vm3921_vm10, %v3892_v52, %v1260_v50  ;;  %v3097_v52 = vor.u32 %v3445_v2, %v3094_v3 }
 0x164   :  { %v1271_v4 = vrot.slane %v1264_v61, 5 }
 0x165   :  { %1804 = vmatpush.bf16.msrb.mxu1 %v2969_v5  ;;  %1832 = vmatpush.bf16.msrb.mxu3 %v3097_v52 }
 0x166   :  { %v1275_v9 = vsel %vm1274_vm13, %v1270_v63, %v1271_v4 }
 0x167   :  { %v1277_v11 = vsel %vm1276_vm15, %v1273_v8, %v1275_v9 }
 0x168   :  { %v1279_v12 = vmul.f32 %v1277_v11, %v1220_v7 }
 0x16a   :  { %v1284_v18 = vperm.slane %v1279_v12, 3  ;;  %v1281_v19 = vperm.slane %v1279_v12, 0  ;;  %v1282_v21 = vperm.slane %v1279_v12, 1  ;;  %v1283_v22 = vperm.slane %v1279_v12, 2 }
 0x16c   :  { %v1292_v13 = vmul.f32 %v1284_v18, %v3853_v0  ;;  %v1296_v24 = vmul.f32 %v1284_v18, %v3856_v42  ;;  %v1289_v25 = vmul.f32 %v1281_v19, %v3823_v36  ;;  %v1293_v26 = vmul.f32 %v1281_v19, %v3825_v37 }
 0x16d   :  { %v1290_v56 = vmul.f32 %v1282_v21, %v3814_v28  ;;  %v1294_v27 = vmul.f32 %v1282_v21, %v3816_v29  ;;  %v1291_v31 = vmul.f32 %v1283_v22, %v3832_v47  ;;  %v1295_v32 = vmul.f32 %v1283_v22, %v3834_v48 }
 0x16e   :  { %v1310_v33 = vadd.f32 %v1302_v16, %v1292_v13  ;;  %v1314_v34 = vadd.f32 %v1302_v16, %v1296_v24  ;;  %v1307_v38 = vadd.f32 %v1299_v17, %v1289_v25  ;;  %v1311_v39 = vadd.f32 %v1299_v17, %v1293_v26 }
 0x16f   :  { %v1308_v40 = vadd.f32 %v1300_v60, %v1290_v56  ;;  %v1312_v0 = vadd.f32 %v1300_v60, %v1294_v27  ;;  %v1309_v62 = vadd.f32 %v1301_v23, %v1291_v31  ;;  %v1313_v42 = vadd.f32 %v1301_v23, %v1295_v32 }
 0x170   :  { %v1330_v41 = vmul.f32 0.2, %v1314_v34  ;;  %vm1315_vm0 = vcmp.ge.f32.partialorder %v1307_v38, 0.0  ;;  %vm1319_vm1 = vcmp.ge.f32.partialorder %v1311_v39, 0.0  ;;  %v1323_v36 = vmul.f32 0.2, %v1307_v38 }
 0x171   :  { %v1327_v37 = vmul.f32 0.2, %v1311_v39  ;;  %vm1316_vm2 = vcmp.ge.f32.partialorder %v1308_v40, 0.0  ;;  %vm1320_vm3 = vcmp.ge.f32.partialorder %v1312_v0, 0.0  ;;  %v1324_v28 = vmul.f32 0.2, %v1308_v40 }
 0x172   :  { %v1331_v29 = vsel %vm1315_vm0, %v1307_v38, %v1323_v36  ;;  %v1328_v47 = vmul.f32 0.2, %v1312_v0  ;;  %vm1317_vm4 = vcmp.ge.f32.partialorder %v1309_v62, 0.0  ;;  %vm1321_vm5 = vcmp.ge.f32.partialorder %v1313_v42, 0.0 }
 0x173   :  { %v1335_v48 = vsel %vm1319_vm1, %v1311_v39, %v1327_v37  ;;  %v1332_v55 = vsel %vm1316_vm2, %v1308_v40, %v1324_v28  ;;  %v1325_v30 = vmul.f32 0.2, %v1309_v62  ;;  %v1329_v59 = vmul.f32 0.2, %v1313_v42 }
 0x174   :  { %v1339_v44 = vpack.c.bf16 %v1335_v48, %v1331_v29  ;;  %v1336_v45 = vsel %vm1320_vm3, %v1312_v0, %v1328_v47  ;;  %vm1318_vm6 = vcmp.ge.f32.partialorder %v1310_v33, 0.0  ;;  %vm1322_vm7 = vcmp.ge.f32.partialorder %v1314_v34, 0.0 }
 0x175   :  { %v1340_v46 = vpack.c.bf16 %v1336_v45, %v1332_v55  ;;  %v1333_v49 = vsel %vm1317_vm4, %v1309_v62, %v1325_v30  ;;  %v1337_v50 = vsel %vm1321_vm5, %v1313_v42, %v1329_v59  ;;  %v1326_v14 = vmul.f32 0.2, %v1310_v33  ;;  %v3468_v55 = vld [vmem:[#allocation9 + $0x38] sm:$0xff] }
 0x176   :  { %1735 = vmatmul.bf16.vlgmr.msra.gmra.mxu0 %v1339_v44  ;;  %v1341_v51 = vpack.c.bf16 %v1337_v50, %v1333_v49  ;;  %v1338_v15 = vsel %vm1322_vm7, %v1314_v34, %v1330_v41  ;;  %v3476_v30 = vld [vmem:[#allocation9 + $0x78] sm:$0xff]  ;;  %v3467_v49 = vld [vmem:[#allocation9 + $0x30] sm:$0xff]  ;;  %vm2229_vm7 = vcmask 523264  }
 0x177   :  { %1749 = vmatmul.bf16.vlgmr.msra.gmra.mxu1 %v1340_v46  ;;  %v1334_v53 = vsel %vm1318_vm6, %v1310_v33, %v1326_v14  ;;  %2071 = vmatpush.bf16.msra.mxu0 %v3468_v55  ;;  %v3475_v50 = vld [vmem:[#allocation9 + $0x70] sm:$0xff] }
 0x178   :  { %1763 = vmatmul.bf16.vlgmr.msra.gmra.mxu2 %v1341_v51  ;;  %v1342_v54 = vpack.c.bf16 %v1338_v15, %v1334_v53  ;;  %2085 = vmatpush.bf16.msra.mxu1 %v3476_v30 }
 0x17a   :  { %1777 = vmatmul.bf16.vlgmr.msra.gmra.mxu3 %v1342_v54 }
 0x17b   :  { %2072 = vmatpush.bf16.msra.mxu0 %v3467_v49 }
 0x17c   :  { %2086 = vmatpush.bf16.msra.mxu1 %v3475_v50 }
 0x186   :  { %1791 = vmatmul.bf16.vlgmr.msrb.gmra.mxu0 %v1339_v44 }
 0x187   :  { %1805 = vmatmul.bf16.vlgmr.msrb.gmra.mxu1 %v1340_v46 }
 0x188   :  { %1819 = vmatmul.bf16.vlgmr.msrb.gmra.mxu2 %v1341_v51 }
 0x18a   :  { %1833 = vmatmul.bf16.vlgmr.msrb.gmra.mxu3 %v1342_v54 }
 0x1f3   :  { %v1736_v57 = vpop.f32.mrf.mxu0 }
 0x1f4   :  { %v1750_v43 = vpop.f32.mrf.mxu1 }
 0x1f5   :  { %v1751_v2 = vadd.f32 %v1750_v43, %v1736_v57  ;;  %v3466_v43 = vld [vmem:[#allocation9 + $0x28] sm:$0xff] }
 0x1f6   :  { %2073 = vmatpush.bf16.msra.mxu0 %v3466_v43 }
 0x1fb   :  { %v1764_v58 = vpop.f32.mrf.mxu2  ;;  %v1738_v61 = vpop.f32.mrf.mxu0 }
 0x1fc   :  { %v1752_v63 = vpop.f32.mrf.mxu1  ;;  %v1765_v3 = vadd.f32 %v1764_v58, %v1751_v2  ;;  %v3474_v58 = vld [vmem:[#allocation9 + $0x68] sm:$0xff]  ;;  %v3465_v2 = vld [vmem:[#allocation9 + $0x20] sm:$0xff] }
 0x1fd   :  { %v1778_v1 = vpop.f32.mrf.mxu3  ;;  %v1753_v4 = vadd.f32 %v1752_v63, %v1738_v61  ;;  %2087 = vmatpush.bf16.msra.mxu1 %v3474_v58  ;;  %2074 = vmatpush.bf16.msra.mxu0 %v3465_v2 }
 0x1fe   :  { %v1779_v8 = vadd.f32 %v1778_v1, %v1765_v3  ;;  %v3473_v3 = vld [vmem:[#allocation9 + $0x60] sm:$0xff] }
 0x201   :  { %2088 = vmatpush.bf16.msra.mxu1 %v3473_v3 }
 0x203   :  { %v1766_v5 = vpop.f32.mrf.mxu2  ;;  %v1792_v7 = vpop.f32.mrf.mxu0 }
 0x204   :  { %v1767_v6 = vadd.f32 %v1766_v5, %v1753_v4  ;;  %v1806_v52 = vpop.f32.mrf.mxu1 }
 0x205   :  { %v1780_v35 = vpop.f32.mrf.mxu3  ;;  %v1807_v60 = vadd.f32 %v1806_v52, %v1792_v7  ;;  %v3464_v7 = vld [vmem:[#allocation9 + $0x18] sm:$0xff] }
 0x206   :  { %v1781_v9 = vadd.f32 %v1780_v35, %v1767_v6  ;;  %v3472_v35 = vld [vmem:[#allocation9 + $0x58] sm:$0xff]  ;;  %2075 = vmatpush.bf16.msra.mxu0 %v3464_v7 }
 0x207   :  { %2089 = vmatpush.bf16.msra.mxu1 %v3472_v35 }
 0x208   :  { %v1839_v10 = vadd.f32 %v1781_v9, %v1779_v8 }
 0x20a   :  { %v1840_v11 = vrot.slane %v1839_v10, 4 }
 0x20b   :  { %v1820_v12 = vpop.f32.mrf.mxu2  ;;  %v1794_v19 = vpop.f32.mrf.mxu0 }
 0x20c   :  { %v1841_v16 = vadd.f32 %v1840_v11, %v1839_v10  ;;  %v1808_v21 = vpop.f32.mrf.mxu1  ;;  %v1821_v13 = vadd.f32 %v1820_v12, %v1807_v60  ;;  %v3471_v10 = vld [vmem:[#allocation9 + $0x50] sm:$0xff] }
 0x20d   :  { %v1834_v17 = vpop.f32.mrf.mxu3  ;;  %v1809_v24 = vadd.f32 %v1808_v21, %v1794_v19  ;;  %2090 = vmatpush.bf16.msra.mxu1 %v3471_v10  ;;  %v3461_v21 = vld [vmem:[#allocation9] sm:$0xff]  ;;  %v3483_v10 = vld [vmem:[%s4055_s10 + $0x30] sm:$0xff] }
 0x20e   :  { %v1842_v18 = vrot.slane %v1841_v16, 2  ;;  %v1835_v32 = vadd.f32 %v1834_v17, %v1821_v13  ;;  %v3470_v17 = vld [vmem:[#allocation9 + $0x48] sm:$0xff] }
 0x210   :  { %v1843_v22 = vadd.f32 %v1842_v18, %v1841_v16  ;;  %v3462_v16 = vld [vmem:[#allocation9 + $0x8] sm:$0xff] }
 0x211   :  { %2091 = vmatpush.bf16.msra.mxu1 %v3470_v17 }
 0x212   :  { %v1844_v23 = vrot.slane %v1843_v22, 1 }
 0x213   :  { %v1822_v25 = vpop.f32.mrf.mxu2 }
 0x214   :  { %v1845_v26 = vadd.f32 %v1844_v23, %v1843_v22  ;;  %v1823_v56 = vadd.f32 %v1822_v25, %v1809_v24  ;;  %v3469_v22 = vld [vmem:[#allocation9 + $0x40] sm:$0xff] }
 0x215   :  { %v1836_v27 = vpop.f32.mrf.mxu3  ;;  %2092 = vmatpush.bf16.msra.mxu1 %v3469_v22  ;;  %v3481_v22 = vld [vmem:[%s4055_s10 + $0x20] sm:$0xff] }
 0x216   :  { %v1853_v31 = vmul.f32 %v1845_v26, %v3811_v20  ;;  %v1837_v33 = vadd.f32 %v1836_v27, %v1823_v56 }
 0x218   :  { %v3949_v34 = vsub.f32 %v1779_v8, %v1853_v31  ;;  %v3951_v38 = vsub.f32 %v1781_v9, %v1853_v31  ;;  %v1846_v39 = vadd.f32 %v1837_v33, %v1835_v32  ;;  %v3463_v9 = vld [vmem:[#allocation9 + $0x10] sm:$0xff] }
 0x219   :  { %2076 = vmatpush.bf16.msra.mxu0 %v3463_v9 }
 0x21a   :  { %v1859_v40 = vmul.f32 %v3949_v34, %v3949_v34  ;;  %v1861_v0 = vmul.f32 %v3951_v38, %v3951_v38  ;;  %v1847_v62 = vrot.slane %v1846_v39, 4 }
 0x21c   :  { %v1863_v42 = vadd.f32 %v1861_v0, %v1859_v40  ;;  %v1848_v41 = vadd.f32 %v1847_v62, %v1846_v39  ;;  %v1881_v0 = vld [vmem:[%s4050_s5] sm:$0x3] }
 0x21d   :  { %2077 = vmatpush.bf16.msra.mxu0 %v3462_v16  ;;  %v3482_v16 = vld [vmem:[%s4055_s10 + $0x28] sm:$0xff] }
 0x21e   :  { %v1864_v36 = vrot.slane %v1863_v42, 4  ;;  %v1849_v37 = vrot.slane %v1848_v41, 2 }
 0x220   :  { %v1865_v28 = vadd.f32 %v1864_v36, %v1863_v42  ;;  %v1850_v29 = vadd.f32 %v1849_v37, %v1848_v41  ;;  %v1919_v36 = vld [vmem:[%s4051_s6] sm:$0x3] }
 0x221   :  { %2078 = vmatpush.bf16.msra.mxu0 %v3461_v21 }
 0x222   :  { %v1866_v47 = vrot.slane %v1865_v28, 2  ;;  %v1851_v48 = vrot.slane %v1850_v29, 1 }
 0x224   :  { %v1867_v59 = vadd.f32 %v1866_v47, %v1865_v28  ;;  %v1852_v44 = vadd.f32 %v1851_v48, %v1850_v29  ;;  %v1921_v47 = vperm.slane %v1919_v36, 0  ;;  %v1922_v48 = vperm.slane %v1919_v36, 1 }
 0x226   :  { %v1868_v45 = vrot.slane %v1867_v59, 1  ;;  %v1854_v46 = vmul.f32 %v1852_v44, %v3811_v20 }
 0x228   :  { %v1869_v14 = vadd.f32 %v1868_v45, %v1867_v59  ;;  %v3958_v51 = vsub.f32 %v1835_v32, %v1854_v46  ;;  %v3960_v15 = vsub.f32 %v1837_v33, %v1854_v46 }
 0x22a   :  { %v1877_v53 = vmul.f32 %v1869_v14, %v3811_v20  ;;  %v1860_v54 = vmul.f32 %v3958_v51, %v3958_v51  ;;  %v1862_v57 = vmul.f32 %v3960_v15, %v3960_v15 }
 0x22c   :  { %v1870_v61 = vadd.f32 %v1862_v57, %v1860_v54  ;;  %v1879_v63 = vmax.f32 %v1877_v53, 0.0 }
 0x22e   :  { %v1871_v1 = vrot.slane %v1870_v61, 4  ;;  %v1882_v5 = vadd.f32 1e-05, %v1879_v63 }
 0x230   :  { %v1872_v4 = vadd.f32 %v1871_v1, %v1870_v61  ;;  %3514 = vrsqrt.f32 %v1882_v5  ;;  %vm1890_vm13 = vweird.f32 %v1882_v5 }
 0x232   :  { %v1873_v6 = vrot.slane %v1872_v4, 2 }
 0x234   :  { %v1874_v52 = vadd.f32 %v1873_v6, %v1872_v4 }
 0x236   :  { %v1875_v8 = vrot.slane %v1874_v52, 1  ;;  %v3515_v18 = vpop.eup %3514 }
 0x237   :  { %v1885_v23 = vmul.f32 %v3515_v18, %v1882_v5  ;;  %vm1891_vm10 = vweird.f32 %v3515_v18 }
 0x238   :  { %v1876_v11 = vadd.f32 %v1875_v8, %v1874_v52  ;;  %vm1892_vm14 = vmor %vm1890_vm13, %vm1891_vm10  ;;  %v3484_v52 = vld [vmem:[%s4055_s10 + $0x38] sm:$0xff] }
 0x239   :  { %v1886_v13 = vmul.f32 %v3515_v18, %v1885_v23  ;;  %2215 = vmatpush.bf16.msra.mxu2 %v3484_v52 }
 0x23a   :  { %v1878_v12 = vmul.f32 %v1876_v11, %v3811_v20 }
 0x23b   :  { %v1887_v25 = vmul.f32 0.5, %v1886_v13  ;;  %v3480_v13 = vld [vmem:[%s4055_s10 + $0x18] sm:$0xff] }
 0x23c   :  { %v1880_v19 = vmax.f32 %v1878_v12, 0.0 }
 0x23d   :  { %v1888_v27 = vsub.f32 1.5, %v1887_v25  ;;  %2216 = vmatpush.bf16.msra.mxu2 %v3483_v10  ;;  %v3488_v10 = vld [vmem:[%s4058_s13 + $0x18] sm:$0xff] }
 0x23e   :  { %v1883_v60 = vadd.f32 1e-05, %v1880_v19  ;;  %2329 = vmatpush.bf16.msra.mxu3 %v3488_v10 }
 0x23f   :  { %v1889_v33 = vmul.f32 %v3515_v18, %v1888_v27 }
 0x240   :  { %3516 = vrsqrt.f32 %v1883_v60  ;;  %vm1900_vm11 = vweird.f32 %v1883_v60 }
 0x241   :  { %v1893_v42 = vsel %vm1892_vm14, %v3515_v18, %v1889_v33  ;;  %2217 = vmatpush.bf16.msra.mxu2 %v3482_v16  ;;  %v3487_v16 = vld [vmem:[%s4058_s13 + $0x10] sm:$0xff] }
 0x242   :  { %2330 = vmatpush.bf16.msra.mxu3 %v3487_v16 }
 0x245   :  { %2218 = vmatpush.bf16.msra.mxu2 %v3481_v22 }
 0x246   :  { %v3517_v24 = vpop.eup %3516 }
 0x247   :  { %v1895_v26 = vmul.f32 %v3517_v24, %v1883_v60  ;;  %vm1901_vm9 = vweird.f32 %v3517_v24 }
 0x248   :  { %vm1902_vm12 = vmor %vm1900_vm11, %vm1901_vm9 }
 0x249   :  { %v1896_v56 = vmul.f32 %v3517_v24, %v1895_v26  ;;  %2219 = vmatpush.bf16.msra.mxu2 %v3480_v13  ;;  %v3479_v26 = vld [vmem:[%s4055_s10 + $0x10] sm:$0xff] }
 0x24b   :  { %v1897_v31 = vmul.f32 0.5, %v1896_v56 }
 0x24d   :  { %v1898_v32 = vsub.f32 1.5, %v1897_v31  ;;  %2220 = vmatpush.bf16.msra.mxu2 %v3479_v26  ;;  %v3478_v31 = vld [vmem:[%s4055_s10 + $0x8] sm:$0xff] }
 0x24f   :  { %v1899_v39 = vmul.f32 %v3517_v24, %v1898_v32 }
 0x251   :  { %v1903_v40 = vsel %vm1902_vm12, %v3517_v24, %v1899_v39  ;;  %2221 = vmatpush.bf16.msra.mxu2 %v3478_v31  ;;  %v3477_v39 = vld [vmem:[%s4055_s10] sm:$0xff] }
 0x252   :  { %v1906_v62 = vrot.slane %v1903_v40, 7  ;;  %v2255_v31 = vld [vmem:[%s4056_s11] sm:$0x1] }
 0x254   :  { %v1907_v41 = vsel %vm1272_vm8, %v1893_v42, %v1906_v62 }
 0x255   :  { %v1909_v37 = vmul.f32 %v1907_v41, %v1881_v0  ;;  %2222 = vmatpush.bf16.msra.mxu2 %v3477_v39 }
 0x257   :  { %v1911_v28 = vperm.slane %v1909_v37, 0  ;;  %v1912_v29 = vperm.slane %v1909_v37, 1 }
 0x259   :  { %v1915_v55 = vmul.f32 %v1911_v28, %v3949_v34  ;;  %v1916_v30 = vmul.f32 %v1912_v29, %v3958_v51  ;;  %v1917_v59 = vmul.f32 %v1911_v28, %v3951_v38  ;;  %v1918_v44 = vmul.f32 %v1912_v29, %v3960_v15  ;;  %v2120_v28 = vld [vmem:[%s4053_s8] sm:$0x1] }
 0x25b   :  { %v1925_v45 = vadd.f32 %v1921_v47, %v1915_v55  ;;  %v1926_v46 = vadd.f32 %v1922_v48, %v1916_v30  ;;  %v1927_v49 = vadd.f32 %v1921_v47, %v1917_v59  ;;  %v1928_v50 = vadd.f32 %v1922_v48, %v1918_v44  ;;  %v3501_v30 = vld [vmem:[%s4054_s9] ss:$0 sm:$0xff] }
 0x25d   :  { %v1936_v14 = vmul.f32 0.2, %v1928_v50  ;;  %vm1929_vm8 = vcmp.ge.f32.partialorder %v1925_v45, 0.0  ;;  %vm1931_vm15 = vcmp.ge.f32.partialorder %v1927_v49, 0.0  ;;  %v1933_v53 = vmul.f32 0.2, %v1925_v45 }
 0x25e   :  { %v1935_v54 = vmul.f32 0.2, %v1927_v49  ;;  %vm1930_vm0 = vcmp.ge.f32.partialorder %v1926_v46, 0.0  ;;  %vm1932_vm1 = vcmp.ge.f32.partialorder %v1928_v50, 0.0  ;;  %v1934_v57 = vmul.f32 0.2, %v1926_v46 }
 0x25f   :  { %v1937_v43 = vsel %vm1929_vm8, %v1925_v45, %v1933_v53  ;;  %v1940_v34 = vsel %vm1932_vm1, %v1928_v50, %v1936_v14 }
 0x260   :  { %v1939_v58 = vsel %vm1931_vm15, %v1927_v49, %v1935_v54  ;;  %v1938_v51 = vsel %vm1930_vm0, %v1926_v46, %v1934_v57 }
 0x261   :  { %v1941_v61 = vpack.c.bf16 %v1939_v58, %v1937_v43  ;;  %v1942_v38 = vpack.c.bf16 %v1940_v34, %v1938_v51 }
 0x263   :  { %2079 = vmatmul.bf16.vlgmr.msra.gmra.mxu0 %v1941_v61  ;;  %2093 = vmatmul.bf16.vlgmr.msra.gmra.mxu1 %v1942_v38 }
 0x2e0   :  { %v2080_v15 = vpop.f32.mrf.mxu0  ;;  %v2094_v63 = vpop.f32.mrf.mxu1 }
 0x2e1   :  { %v2095_v3 = vadd.f32 %v2094_v63, %v2080_v15 }
 0x2e8   :  { %v2082_v1 = vpop.f32.mrf.mxu0  ;;  %v2096_v2 = vpop.f32.mrf.mxu1 }
 0x2e9   :  { %v2097_v4 = vadd.f32 %v2096_v2, %v2082_v1 }
 0x2eb   :  { %v2099_v5 = vadd.f32 %v2097_v4, %v2095_v3 }
 0x2ed   :  { %v2100_v6 = vrot.slane %v2099_v5, 4 }
 0x2ef   :  { %v2101_v7 = vadd.f32 %v2100_v6, %v2099_v5 }
 0x2f1   :  { %v2102_v35 = vrot.slane %v2101_v7, 2 }
 0x2f3   :  { %v2103_v8 = vadd.f32 %v2102_v35, %v2101_v7 }
 0x2f5   :  { %v2104_v9 = vrot.slane %v2103_v8, 1 }
 0x2f7   :  { %v2105_v11 = vadd.f32 %v2104_v9, %v2103_v8 }
 0x2f9   :  { %v2106_v12 = vmul.f32 %v2105_v11, %v3811_v20 }
 0x2fb   :  { %v2107_v17 = vsub.f32 %v2095_v3, %v2106_v12  ;;  %v2108_v18 = vsub.f32 %v2097_v4, %v2106_v12 }
 0x2fd   :  { %v2109_v19 = vmul.f32 %v2107_v17, %v2107_v17  ;;  %v2110_v21 = vmul.f32 %v2108_v18, %v2108_v18 }
 0x2ff   :  { %v2111_v60 = vadd.f32 %v2110_v21, %v2109_v19  ;;  %v3486_v19 = vld [vmem:[%s4058_s13 + $0x8] sm:$0xff] }
 0x300   :  { %2331 = vmatpush.bf16.msra.mxu3 %v3486_v19 }
 0x301   :  { %v2112_v23 = vrot.slane %v2111_v60, 4 }
 0x303   :  { %v2113_v24 = vadd.f32 %v2112_v23, %v2111_v60  ;;  %v3485_v60 = vld [vmem:[%s4058_s13] sm:$0xff] }
 0x304   :  { %2332 = vmatpush.bf16.msra.mxu3 %v3485_v60 }
 0x305   :  { %v2114_v25 = vrot.slane %v2113_v24, 2 }
 0x307   :  { %v2115_v56 = vadd.f32 %v2114_v25, %v2113_v24 }
 0x309   :  { %v2116_v27 = vrot.slane %v2115_v56, 1 }
 0x30b   :  { %v2117_v32 = vadd.f32 %v2116_v27, %v2115_v56 }
 0x30d   :  { %v2118_v33 = vmul.f32 %v2117_v32, %v3811_v20 }
 0x30f   :  { %v2119_v40 = vmax.f32 %v2118_v33, 0.0 }
 0x311   :  { %v2121_v0 = vadd.f32 1e-05, %v2119_v40  ;;  %v3502_v40 = vld [vmem:[%s4057_s12] ss:$0 sm:$0xff] }
 0x313   :  { %3518 = vrsqrt.f32 %v2121_v0  ;;  %vm2128_vm3 = vweird.f32 %v2121_v0 }
 0x319   :  { %v3519_v62 = vpop.eup %3518 }
 0x31a   :  { %v2123_v42 = vmul.f32 %v3519_v62, %v2121_v0  ;;  %vm2129_vm2 = vweird.f32 %v3519_v62 }
 0x31b   :  { %vm2130_vm4 = vmor %vm2128_vm3, %vm2129_vm2 }
 0x31c   :  { %v2124_v41 = vmul.f32 %v3519_v62, %v2123_v42 }
 0x31e   :  { %v2125_v36 = vmul.f32 0.5, %v2124_v41 }
 0x320   :  { %v2126_v37 = vsub.f32 1.5, %v2125_v36 }
 0x322   :  { %v2127_v29 = vmul.f32 %v3519_v62, %v2126_v37 }
 0x324   :  { %v2131_v47 = vsel %vm2130_vm4, %v3519_v62, %v2127_v29 }
 0x325   :  { %v2132_v48 = vmul.f32 %v2131_v47, %v2120_v28 }
 0x327   :  { %v2134_v55 = vperm.slane %v2132_v48, 0  ;;  %v3503_v48 = vld [vmem:[%s4059_s14] ss:$0 sm:$0xff] }
 0x329   :  { %v2136_v59 = vmul.f32 %v2134_v55, %v2107_v17  ;;  %v2137_v44 = vmul.f32 %v2134_v55, %v2108_v18 }
 0x32b   :  { %v2142_v45 = vadd.f32 %v3501_v30, %v2136_v59  ;;  %v2143_v46 = vadd.f32 %v3501_v30, %v2137_v44 }
 0x32d   :  { %v2147_v49 = vmul.f32 0.2, %v2143_v46  ;;  %vm2144_vm5 = vcmp.ge.f32.partialorder %v2142_v45, 0.0  ;;  %vm2145_vm6 = vcmp.ge.f32.partialorder %v2143_v46, 0.0  ;;  %v2146_v50 = vmul.f32 0.2, %v2142_v45 }
 0x32f   :  { %v2148_v14 = vsel %vm2144_vm5, %v2142_v45, %v2146_v50  ;;  %v2149_v53 = vsel %vm2145_vm6, %v2143_v46, %v2147_v49 }
 0x330   :  { %v2150_v54 = vpack.c.bf16 %v2149_v53, %v2148_v14 }
 0x332   :  { %2223 = vmatmul.bf16.vlgmr.msra.gmra.mxu2 %v2150_v54 }
 0x3b5   :  { %v2224_v57 = vpop.f32.mrf.mxu2 }
 0x3b6   :  { %v2230_v34 = vsel %vm2229_vm7, %v2224_v57, 0.0 }
 0x3bd   :  { %v2226_v43 = vpop.f32.mrf.mxu2 }
 0x3be   :  { %v2231_v58 = vsel %vm2229_vm7, %v2226_v43, 0.0 }
 0x3bf   :  { %v2232_v51 = vadd.f32 %v2231_v58, %v2230_v34 }
 0x3c1   :  { %v2233_v61 = vrot.slane %v2232_v51, 4 }
 0x3c3   :  { %v2234_v38 = vadd.f32 %v2233_v61, %v2232_v51 }
 0x3c5   :  { %v2235_v15 = vrot.slane %v2234_v38, 2 }
 0x3c7   :  { %v2236_v63 = vadd.f32 %v2235_v15, %v2234_v38 }
 0x3c9   :  { %v2237_v1 = vrot.slane %v2236_v63, 1 }
 0x3cb   :  { %v2238_v2 = vadd.f32 %v2237_v1, %v2236_v63 }
 0x3cd   :  { %v2239_v3 = vmul.f32 %v2238_v2, %v3811_v20 }
 0x3cf   :  { %v2240_v4 = vsub.f32 %v2224_v57, %v2239_v3  ;;  %v2241_v5 = vsub.f32 %v2226_v43, %v2239_v3 }
 0x3d1   :  { %v2242_v6 = vmul.f32 %v2240_v4, %v2240_v4  ;;  %v2243_v7 = vmul.f32 %v2241_v5, %v2241_v5 }
 0x3d3   :  { %v2244_v35 = vsel %vm2229_vm7, %v2242_v6, 0.0  ;;  %v2245_v52 = vsel %vm2229_vm7, %v2243_v7, 0.0 }
 0x3d4   :  { %v2246_v8 = vadd.f32 %v2245_v52, %v2244_v35 }
 0x3d6   :  { %v2247_v9 = vrot.slane %v2246_v8, 4 }
 0x3d8   :  { %v2248_v11 = vadd.f32 %v2247_v9, %v2246_v8 }
 0x3da   :  { %v2249_v12 = vrot.slane %v2248_v11, 2 }
 0x3dc   :  { %v2250_v17 = vadd.f32 %v2249_v12, %v2248_v11 }
 0x3de   :  { %v2251_v18 = vrot.slane %v2250_v17, 1 }
 0x3e0   :  { %v2252_v21 = vadd.f32 %v2251_v18, %v2250_v17 }
 0x3e2   :  { %v2253_v22 = vmul.f32 %v2252_v21, %v3811_v20 }
 0x3e4   :  { %v2254_v23 = vmax.f32 %v2253_v22, 0.0 }
 0x3e6   :  { %v2256_v13 = vadd.f32 1e-05, %v2254_v23 }
 0x3e8   :  { %3520 = vrsqrt.f32 %v2256_v13  ;;  %vm2263_vm10 = vweird.f32 %v2256_v13 }
 0x3ee   :  { %v3521_v24 = vpop.eup %3520 }
 0x3ef   :  { %v2258_v25 = vmul.f32 %v3521_v24, %v2256_v13  ;;  %vm2264_vm9 = vweird.f32 %v3521_v24 }
 0x3f0   :  { %vm2265_vm11 = vmor %vm2263_vm10, %vm2264_vm9 }
 0x3f1   :  { %v2259_v26 = vmul.f32 %v3521_v24, %v2258_v25 }
 0x3f3   :  { %v2260_v56 = vmul.f32 0.5, %v2259_v26 }
 0x3f5   :  { %v2261_v27 = vsub.f32 1.5, %v2260_v56 }
 0x3f7   :  { %v2262_v32 = vmul.f32 %v3521_v24, %v2261_v27 }
 0x3f9   :  { %v2266_v20 = vsel %vm2265_vm11, %v3521_v24, %v2262_v32 }
 0x3fa   :  { %v2267_v33 = vmul.f32 %v2266_v20, %v2255_v31 }
 0x3fc   :  { %v2269_v39 = vperm.slane %v2267_v33, 0 }
 0x3fe   :  { %v2271_v0 = vmul.f32 %v2269_v39, %v2240_v4  ;;  %v2272_v62 = vmul.f32 %v2269_v39, %v2241_v5 }
 0x400   :  { %v2277_v42 = vadd.f32 %v3502_v40, %v2271_v0  ;;  %v2278_v41 = vadd.f32 %v3502_v40, %v2272_v62 }
 0x402   :  { %vm2279_vm12 = vcmp.ge.f32.partialorder %v2277_v42, 0.0  ;;  %vm2280_vm13 = vcmp.ge.f32.partialorder %v2278_v41, 0.0  ;;  %v2281_v36 = vmul.f32 0.2, %v2277_v42  ;;  %v2282_v37 = vmul.f32 0.2, %v2278_v41 }
 0x404   :  { %v2283_v28 = vsel %vm2279_vm12, %v2277_v42, %v2281_v36  ;;  %v2284_v29 = vsel %vm2280_vm13, %v2278_v41, %v2282_v37 }
 0x405   :  { %v2285_v47 = vpack.c.bf16 %v2284_v29, %v2283_v28 }
 0x407   :  { %3266 = vmatmul.msk.bf16.vlgmr.msra.gmra.mxu3 %vm2229_vm7, %v2285_v47 }
 0x48a   :  { %v2334_v55 = vpop.f32.mrf.mxu3 }
 0x48b   :  { %v2335_v30 = vadd.f32 %v3503_v48, %v2334_v55 }
 0x48d   :  { %v3267_v59 = vmul.f32 -1.442695, %v2335_v30 }
 0x48f   :  { %3522 = vpow2.f32 %v3267_v59 }
 0x492   :  { %v2336_v44 = vpop.f32.mrf.mxu3 }
 0x493   :  { %v2337_v45 = vadd.f32 %v3503_v48, %v2336_v44 }
 0x495   :  { %v3523_v46 = vpop.eup %3522  ;;  %v3268_v49 = vmul.f32 -1.442695, %v2337_v45 }
 0x496   :  { %v2345_v50 = vadd.f32 1.0, %v3523_v46 }
 0x497   :  { %3524 = vpow2.f32 %v3268_v49 }
 0x498   :  { %3526 = vrcp.f32 %v2345_v50  ;;  %v2358_v34 = vand.u32 2147483648, %v2345_v50  ;;  %v2356_v51 = vand.u32 2147483647, %v2345_v50  ;;  %vm2352_vm8 = vweird.f32 %v2345_v50 }
 0x49a   :  { %v2359_v15 = vor.u32 1.1754944e-38, %v2358_v34  ;;  %vm2357_vm0 = vcmp.eq.f32.partialorder %v2356_v51, 8.507059e+37 }
 0x49d   :  { %v3525_v14 = vpop.eup %3524 }
 0x49e   :  { %v3527_v53 = vpop.eup %3526  ;;  %v2346_v54 = vadd.f32 1.0, %v3525_v14 }
 0x49f   :  { %v2348_v57 = vmul.f32 %v3527_v53, %v2345_v50  ;;  %vm2353_vm14 = vweird.f32 %v3527_v53 }
 0x4a0   :  { %3528 = vrcp.f32 %v2346_v54  ;;  %vm2354_vm15 = vmor %vm2352_vm8, %vm2353_vm14  ;;  %v2373_v4 = vand.u32 2147483648, %v2346_v54  ;;  %v2371_v6 = vand.u32 2147483647, %v2346_v54  ;;  %vm2367_vm2 = vweird.f32 %v2346_v54 }
 0x4a1   :  { %v2349_v43 = vsub.f32 1.0, %v2348_v57 }
 0x4a2   :  { %v2374_v35 = vor.u32 1.1754944e-38, %v2373_v4  ;;  %vm2372_vm4 = vcmp.eq.f32.partialorder %v2371_v6, 8.507059e+37 }
 0x4a3   :  { %v2350_v58 = vmul.f32 %v3527_v53, %v2349_v43 }
 0x4a5   :  { %v2351_v61 = vadd.f32 %v3527_v53, %v2350_v58 }
 0x4a6   :  { %v3529_v38 = vpop.eup %3528 }
 0x4a7   :  { %v2355_v63 = vsel %vm2354_vm15, %v3527_v53, %v2351_v61  ;;  %v2363_v1 = vmul.f32 %v3529_v38, %v2346_v54  ;;  %vm2368_vm1 = vweird.f32 %v3529_v38 }
 0x4a8   :  { %v2360_v2 = vsel %vm2357_vm0, %v2359_v15, %v2355_v63  ;;  %vm2369_vm3 = vmor %vm2367_vm2, %vm2368_vm1 }
 0x4a9   :  { %2377 = vst [vmem:[%s4060_s15] sm:$0xff] %v2360_v2  ;;  %v2364_v3 = vsub.f32 1.0, %v2363_v1 }
 0x4ab   :  { %v2365_v5 = vmul.f32 %v3529_v38, %v2364_v3 }
 0x4ad   :  { %v2366_v7 = vadd.f32 %v3529_v38, %v2365_v5 }
 0x4af   :  { %v2370_v52 = vsel %vm2369_vm3, %v3529_v38, %v2366_v7 }
 0x4b0   :  { %v2375_v8 = vsel %vm2372_vm4, %v2374_v35, %v2370_v52 }
 0x4b1   :  { %2378 = vst [vmem:[%s4060_s15 + $0x8] sm:$0xff] %v2375_v8 }
 0x4b2   :  { %2383 = vsyncpa [#allocation3], 1 }
 0x4b3   :  { %2384 = vsyncpa [#allocation5], 1 }
 0x4b4   :  { %2385 = vsyncpa [#allocation8], 1 }

</bundles_post_ra>
